<compile_context>
chip_gen: v5e
topology: v5e:2x2
jax: 0.10.0
libtpu: 0.0.40
codegen_flags: <defaults>
</compile_context>

<pallas_src>
import functools

import jax
import jax.numpy as jnp
from jax.experimental import pallas as pl
from jax.experimental.pallas import tpu as pltpu

EPS = 1e-5


def basic_block_kernel(xpad_ref, xres_ref, wb1_ref, wb2_ref,
                       g1_ref, b1_ref, g2_ref, b2_ref,
                       pool_ref, poolT_ref,
                       out_ref, mid_ref, *, N, H, W, C):
    """All refs are whole-array VMEM blocks (no grid; toy shapes).

    xpad_ref : (N, H+2, W*C)  bf16   H-zero-padded, W/C folded onto lanes
    xres_ref : (N*H, W*C)     f32    unpadded folded x (identity residual)
    wb*_ref  : (3, W*C, W*C)  bf16   banded conv weights, one band per dy tap
    g*/b*    : (1, C)         f32    BN gamma / beta
    pool_ref : (W*C, C)       f32    folds lane axis (w, c) -> channel c
    poolT_ref: (C, W*C)       f32    broadcasts channel c -> lane axis (w, c)
    out_ref  : (N*H, W*C)     f32    lane-dense output slab
    mid_ref  : (N, H+2, W*C)  bf16   scratch: H-padded intermediate
    """
    WC = W * C
    M = N * H
    inv_n = 1.0 / float(N * H * W)

    def conv3x3_banded(src_ref, wb_ref):
        # 3x3 / stride-1 / pad-1 conv == sum over dy of (row-shifted activation
        # slab) @ (banded weight).  dx taps + W zero-padding live in the band.
        acc = None
        for dy in range(3):
            a = src_ref[:, dy:dy + H, :].reshape(M, WC)            # bf16
            t = jnp.dot(a, wb_ref[dy], preferred_element_type=jnp.float32)
            acc = t if acc is None else acc + t                    # init w/ 1st dot
        return acc                                                 # (M, WC) f32

    def bn_affine(y, g_ref, b_ref):
        # Training-mode BN folded into one per-channel affine (scale, shift);
        # one-pass biased batch stats over (N, H, W).
        col_s = jnp.sum(y, axis=0, keepdims=True)                  # (1, WC)
        col_q = jnp.sum(y * y, axis=0, keepdims=True)              # (1, WC)
        mean = jnp.dot(col_s, pool_ref[...]) * inv_n               # (1, C)
        ex2 = jnp.dot(col_q, pool_ref[...]) * inv_n                # (1, C)
        var = ex2 - mean * mean
        scale = g_ref[...] * jax.lax.rsqrt(var + EPS)              # EUP rsqrt
        shift = b_ref[...] - mean * scale
        scale_l = jnp.dot(scale, poolT_ref[...])                   # (1, WC)
        shift_l = jnp.dot(shift, poolT_ref[...])                   # (1, WC)
        return scale_l, shift_l

    # ---- conv1 -> bn1 -> relu (affine fused with relu) ----
    y1 = conv3x3_banded(xpad_ref, wb1_ref)
    s1, t1 = bn_affine(y1, g1_ref, b1_ref)
    y1 = jnp.maximum(y1 * s1 + t1, 0.0)

    # ---- H-pad the intermediate: zero ONLY the 2 halo rows ----
    zrow = jnp.zeros((N, 1, WC), jnp.bfloat16)
    mid_ref[:, 0:1, :] = zrow
    mid_ref[:, H + 1:H + 2, :] = zrow
    mid_ref[:, 1:H + 1, :] = y1.astype(jnp.bfloat16).reshape(N, H, WC)

    # ---- conv2 -> bn2 -> + identity residual -> relu (all fused) ----
    y2 = conv3x3_banded(mid_ref, wb2_ref)
    s2, t2 = bn_affine(y2, g2_ref, b2_ref)
    out_ref[...] = jnp.maximum(y2 * s2 + t2 + xres_ref[...], 0.0)


def _banded_conv_weights(w_hwio, W):
    """(3, 3, Cin, Cout) HWIO -> (3, W*Cin, W*Cout) banded matrices (per dy).

    band[dy][w_in*Cin + c, w_out*Cout + co] = w[dy, dx, c, co] with
    w_in = w_out + dx - 1; out-of-range w_in are simply absent, which
    implements the conv's zero padding along W.
    """
    w_hwio = w_hwio.astype(jnp.float32)
    Cin, Cout = w_hwio.shape[2], w_hwio.shape[3]
    w_in = jnp.arange(W)[:, None]
    w_out = jnp.arange(W)[None, :]
    bands = []
    for dy in range(3):
        band = jnp.zeros((W * Cin, W * Cout), jnp.float32)
        for dx in range(3):
            sel = (w_in == w_out + dx - 1).astype(jnp.float32)     # (W, W)
            band = band + jnp.kron(sel, w_hwio[dy, dx])
        bands.append(band)
    return jnp.stack(bands, axis=0)


def basic_block(x_nchw, w1, g1, b1, w2, g2, b2):
    """x_nchw: (N, C, H, W) f32; conv weights HWIO (3,3,C,C); returns NCHW f32."""
    N, C, H, W = x_nchw.shape
    Cout = w1.shape[-1]
    assert C == Cout, "downsample=None requires inplanes == planes"
    WC = W * C

    # One-time layout plumbing in the wrapper (kernel-facing layout is fixed).
    x = jnp.transpose(x_nchw, (0, 2, 3, 1)).astype(jnp.float32)      # NHWC
    x_fold = x.reshape(N, H, WC)                                     # lane-dense
    x_res = x_fold.reshape(N * H, WC)                                # residual, f32
    x_pad = jnp.pad(x_fold, ((0, 0), (1, 1), (0, 0))).astype(jnp.bfloat16)

    wb1 = _banded_conv_weights(w1, W).astype(jnp.bfloat16)
    wb2 = _banded_conv_weights(w2, W).astype(jnp.bfloat16)

    eye = jnp.eye(C, dtype=jnp.float32)
    pool = jnp.tile(eye, (W, 1))                                     # (W*C, C)
    poolT = jnp.tile(eye, (1, W))                                    # (C, W*C)

    kernel = functools.partial(basic_block_kernel, N=N, H=H, W=W, C=C)

    out_flat = pl.pallas_call(
        kernel,
        out_shape=jax.ShapeDtypeStruct((N * H, WC), jnp.float32),
        in_specs=[pl.BlockSpec(memory_space=pltpu.MemorySpace.VMEM)] * 10,
        out_specs=pl.BlockSpec(memory_space=pltpu.MemorySpace.VMEM),
        scratch_shapes=[pltpu.VMEM((N, H + 2, WC), jnp.bfloat16)],
        compiler_params=pltpu.CompilerParams(
            # Explicit scoped-VMEM budget (v5e default is only 16 MiB); these
            # toy shapes need ~1 MiB, real shapes should tile over H instead.
            vmem_limit_bytes=32 * 1024 * 1024),
    )(x_pad, x_res, wb1, wb2,
      g1.reshape(1, C).astype(jnp.float32), b1.reshape(1, C).astype(jnp.float32),
      g2.reshape(1, C).astype(jnp.float32), b2.reshape(1, C).astype(jnp.float32),
      pool, poolT)

    out_nhwc = out_flat.reshape(N, H, W, C)
    return jnp.transpose(out_nhwc, (0, 3, 1, 2))                     # back to NCHW


def basic_block_reference(x_nchw, w1, g1, b1, w2, g2, b2,
                          conv_dtype=jnp.float32):
    """Pure-JAX reference (lax.conv).  conv_dtype=bfloat16 mirrors the kernel's
    bf16 MXU operands (with f32 accumulation) for a tight comparison."""
    x = jnp.transpose(x_nchw, (0, 2, 3, 1)).astype(jnp.float32)

    def conv(v, w):
        return jax.lax.conv_general_dilated(
            v.astype(conv_dtype), w.astype(conv_dtype),
            window_strides=(1, 1), padding="SAME",
            dimension_numbers=("NHWC", "HWIO", "NHWC"),
            preferred_element_type=jnp.float32)

    def bn(y, g, b):
        mean = jnp.mean(y, axis=(0, 1, 2), keepdims=True)
        var = jnp.mean((y - mean) ** 2, axis=(0, 1, 2), keepdims=True)
        return (y - mean) / jnp.sqrt(var + EPS) * g + b

    out = jnp.maximum(bn(conv(x, w1), g1, b1), 0.0)
    out = bn(conv(out, w2), g2, b2) + x
    out = jnp.maximum(out, 0.0)
    return jnp.transpose(out, (0, 3, 1, 2))


if __name__ == "__main__":
    # inplanes = planes = 16, stride = 1 (identity residual); W*C = 256 lanes.
    N, C, H, W = 2, 16, 16, 16
    key = jax.random.PRNGKey(0)
    kx, k1, k2, kg1, kb1, kg2, kb2 = jax.random.split(key, 7)

    x = jax.random.normal(kx, (N, C, H, W), jnp.float32)
    w1 = jax.random.normal(k1, (3, 3, C, C), jnp.float32) * 0.1      # HWIO
    w2 = jax.random.normal(k2, (3, 3, C, C), jnp.float32) * 0.1      # HWIO
    g1 = 1.0 + 0.1 * jax.random.normal(kg1, (C,), jnp.float32)
    b1 = 0.1 * jax.random.normal(kb1, (C,), jnp.float32)
    g2 = 1.0 + 0.1 * jax.random.normal(kg2, (C,), jnp.float32)
    b2 = 0.1 * jax.random.normal(kb2, (C,), jnp.float32)

    out = jax.block_until_ready(basic_block(x, w1, g1, b1, w2, g2, b2))
    assert out.shape == (N, C, H, W)

    # Tight check vs. a reference that also uses bf16 conv operands / f32 accum.
    ref_bf16 = basic_block_reference(x, w1, g1, b1, w2, g2, b2,
                                     conv_dtype=jnp.bfloat16)
    err_bf16 = float(jnp.max(jnp.abs(out - ref_bf16)))
    assert err_bf16 < 5e-3, f"mismatch vs bf16-operand reference: {err_bf16}"

    # Looser check vs. the full-f32 reference (difference = bf16 MXU operands).
    ref_f32 = basic_block_reference(x, w1, g1, b1, w2, g2, b2)
    err_f32 = float(jnp.max(jnp.abs(out - ref_f32)))
    assert err_f32 < 5e-2, f"mismatch vs f32 reference: {err_f32}"

    print("KERNEL_OK")
</pallas_src>

<mosaic_0001>
module attributes {stable_mosaic.version = 11 : i64} {
  func.func @basic_block_kernel(%arg0: memref<2x18x256xbf16, #tpu.memory_space<vmem>>, %arg1: memref<32x256xf32, #tpu.memory_space<vmem>>, %arg2: memref<3x256x256xbf16, #tpu.memory_space<vmem>>, %arg3: memref<3x256x256xbf16, #tpu.memory_space<vmem>>, %arg4: memref<1x16xf32, #tpu.memory_space<vmem>>, %arg5: memref<1x16xf32, #tpu.memory_space<vmem>>, %arg6: memref<1x16xf32, #tpu.memory_space<vmem>>, %arg7: memref<1x16xf32, #tpu.memory_space<vmem>>, %arg8: memref<256x16xf32, #tpu.memory_space<vmem>>, %arg9: memref<16x256xf32, #tpu.memory_space<vmem>>, %arg10: memref<32x256xf32, #tpu.memory_space<vmem>>, %arg11: memref<2x18x256xbf16, #tpu.memory_space<vmem>>) attributes {dimension_semantics = [], scalar_prefetch = 0 : i64, scratch_operands = 1 : i64, tpu.core_type = #tpu.core_type<tc>} {
    %c0 = arith.constant 0 : index
    %c0_0 = arith.constant 0 : index
    %c0_1 = arith.constant 0 : index
    %0 = vector.load %arg0[%c0, %c0_0, %c0_1] : memref<2x18x256xbf16, #tpu.memory_space<vmem>>, vector<2x16x256xbf16>
    %1 = vector.shape_cast %0 : vector<2x16x256xbf16> to vector<32x256xbf16>
    %c0_2 = arith.constant 0 : index
    %c0_3 = arith.constant 0 : index
    %c0_4 = arith.constant 0 : index
    %2 = vector.load %arg2[%c0_2, %c0_3, %c0_4] : memref<3x256x256xbf16, #tpu.memory_space<vmem>>, vector<1x256x256xbf16>
    %3 = vector.shape_cast %2 : vector<1x256x256xbf16> to vector<256x256xbf16>
    %cst = arith.constant dense<0.000000e+00> : vector<32x256xf32>
    %4 = tpu.matmul %1, %3, %cst {dimension_numbers = #tpu.dot_dimension_numbers<[1], [0], [0], [1], [0, 0, 1, 1], [], []>} : vector<32x256xbf16>, vector<256x256xbf16>, vector<32x256xf32> -> vector<32x256xf32>
    %c0_5 = arith.constant 0 : index
    %c1 = arith.constant 1 : index
    %c0_6 = arith.constant 0 : index
    %5 = vector.load %arg0[%c0_5, %c1, %c0_6] : memref<2x18x256xbf16, #tpu.memory_space<vmem>>, vector<2x16x256xbf16>
    %6 = vector.shape_cast %5 : vector<2x16x256xbf16> to vector<32x256xbf16>
    %c1_7 = arith.constant 1 : index
    %c0_8 = arith.constant 0 : index
    %c0_9 = arith.constant 0 : index
    %7 = vector.load %arg2[%c1_7, %c0_8, %c0_9] : memref<3x256x256xbf16, #tpu.memory_space<vmem>>, vector<1x256x256xbf16>
    %8 = vector.shape_cast %7 : vector<1x256x256xbf16> to vector<256x256xbf16>
    %cst_10 = arith.constant dense<0.000000e+00> : vector<32x256xf32>
    %9 = tpu.matmul %6, %8, %cst_10 {dimension_numbers = #tpu.dot_dimension_numbers<[1], [0], [0], [1], [0, 0, 1, 1], [], []>} : vector<32x256xbf16>, vector<256x256xbf16>, vector<32x256xf32> -> vector<32x256xf32>
    %10 = arith.addf %4, %9 : vector<32x256xf32>
    %c0_11 = arith.constant 0 : index
    %c2 = arith.constant 2 : index
    %c0_12 = arith.constant 0 : index
    %11 = vector.load %arg0[%c0_11, %c2, %c0_12] : memref<2x18x256xbf16, #tpu.memory_space<vmem>>, vector<2x16x256xbf16>
    %12 = vector.shape_cast %11 : vector<2x16x256xbf16> to vector<32x256xbf16>
    %c2_13 = arith.constant 2 : index
    %c0_14 = arith.constant 0 : index
    %c0_15 = arith.constant 0 : index
    %13 = vector.load %arg2[%c2_13, %c0_14, %c0_15] : memref<3x256x256xbf16, #tpu.memory_space<vmem>>, vector<1x256x256xbf16>
    %14 = vector.shape_cast %13 : vector<1x256x256xbf16> to vector<256x256xbf16>
    %cst_16 = arith.constant dense<0.000000e+00> : vector<32x256xf32>
    %15 = tpu.matmul %12, %14, %cst_16 {dimension_numbers = #tpu.dot_dimension_numbers<[1], [0], [0], [1], [0, 0, 1, 1], [], []>} : vector<32x256xbf16>, vector<256x256xbf16>, vector<32x256xf32> -> vector<32x256xf32>
    %16 = arith.addf %10, %15 : vector<32x256xf32>
    %cst_17 = arith.constant dense<0.000000e+00> : vector<256xf32>
    %17 = vector.multi_reduction <add>, %16, %cst_17 [0] : vector<32x256xf32> to vector<256xf32>
    %18 = vector.shape_cast %17 : vector<256xf32> to vector<1x256xf32>
    %19 = arith.mulf %16, %16 : vector<32x256xf32>
    %cst_18 = arith.constant dense<0.000000e+00> : vector<256xf32>
    %20 = vector.multi_reduction <add>, %19, %cst_18 [0] : vector<32x256xf32> to vector<256xf32>
    %21 = vector.shape_cast %20 : vector<256xf32> to vector<1x256xf32>
    %c0_19 = arith.constant 0 : index
    %c0_20 = arith.constant 0 : index
    %22 = vector.load %arg8[%c0_19, %c0_20] : memref<256x16xf32, #tpu.memory_space<vmem>>, vector<256x16xf32>
    %cst_21 = arith.constant dense<0.000000e+00> : vector<1x16xf32>
    %23 = tpu.matmul %18, %22, %cst_21 {dimension_numbers = #tpu.dot_dimension_numbers<[1], [0], [0], [1], [0, 0, 1, 1], [], []>} : vector<1x256xf32>, vector<256x16xf32>, vector<1x16xf32> -> vector<1x16xf32>
    %cst_22 = arith.constant 0.001953125 : f32
    %24 = vector.broadcast %cst_22 : f32 to vector<1x16xf32>
    %25 = arith.mulf %23, %24 : vector<1x16xf32>
    %c0_23 = arith.constant 0 : index
    %c0_24 = arith.constant 0 : index
    %26 = vector.load %arg8[%c0_23, %c0_24] : memref<256x16xf32, #tpu.memory_space<vmem>>, vector<256x16xf32>
    %cst_25 = arith.constant dense<0.000000e+00> : vector<1x16xf32>
    %27 = tpu.matmul %21, %26, %cst_25 {dimension_numbers = #tpu.dot_dimension_numbers<[1], [0], [0], [1], [0, 0, 1, 1], [], []>} : vector<1x256xf32>, vector<256x16xf32>, vector<1x16xf32> -> vector<1x16xf32>
    %cst_26 = arith.constant 0.001953125 : f32
    %28 = vector.broadcast %cst_26 : f32 to vector<1x16xf32>
    %29 = arith.mulf %27, %28 : vector<1x16xf32>
    %30 = arith.mulf %25, %25 : vector<1x16xf32>
    %31 = arith.subf %29, %30 : vector<1x16xf32>
    %c0_27 = arith.constant 0 : index
    %c0_28 = arith.constant 0 : index
    %32 = vector.load %arg4[%c0_27, %c0_28] : memref<1x16xf32, #tpu.memory_space<vmem>>, vector<1x16xf32>
    %cst_29 = arith.constant 9.99999974E-6 : f32
    %33 = vector.broadcast %cst_29 : f32 to vector<1x16xf32>
    %34 = arith.addf %31, %33 : vector<1x16xf32>
    %35 = math.rsqrt %34 : vector<1x16xf32>
    %36 = arith.mulf %32, %35 : vector<1x16xf32>
    %c0_30 = arith.constant 0 : index
    %c0_31 = arith.constant 0 : index
    %37 = vector.load %arg5[%c0_30, %c0_31] : memref<1x16xf32, #tpu.memory_space<vmem>>, vector<1x16xf32>
    %38 = arith.mulf %25, %36 : vector<1x16xf32>
    %39 = arith.subf %37, %38 : vector<1x16xf32>
    %c0_32 = arith.constant 0 : index
    %c0_33 = arith.constant 0 : index
    %40 = vector.load %arg9[%c0_32, %c0_33] : memref<16x256xf32, #tpu.memory_space<vmem>>, vector<16x256xf32>
    %cst_34 = arith.constant dense<0.000000e+00> : vector<1x256xf32>
    %41 = tpu.matmul %36, %40, %cst_34 {dimension_numbers = #tpu.dot_dimension_numbers<[1], [0], [0], [1], [0, 0, 1, 1], [], []>} : vector<1x16xf32>, vector<16x256xf32>, vector<1x256xf32> -> vector<1x256xf32>
    %c0_35 = arith.constant 0 : index
    %c0_36 = arith.constant 0 : index
    %42 = vector.load %arg9[%c0_35, %c0_36] : memref<16x256xf32, #tpu.memory_space<vmem>>, vector<16x256xf32>
    %cst_37 = arith.constant dense<0.000000e+00> : vector<1x256xf32>
    %43 = tpu.matmul %39, %42, %cst_37 {dimension_numbers = #tpu.dot_dimension_numbers<[1], [0], [0], [1], [0, 0, 1, 1], [], []>} : vector<1x16xf32>, vector<16x256xf32>, vector<1x256xf32> -> vector<1x256xf32>
    %44 = vector.broadcast %41 : vector<1x256xf32> to vector<32x256xf32>
    %45 = arith.mulf %16, %44 : vector<32x256xf32>
    %46 = vector.broadcast %43 : vector<1x256xf32> to vector<32x256xf32>
    %47 = arith.addf %45, %46 : vector<32x256xf32>
    %cst_38 = arith.constant 0.000000e+00 : f32
    %48 = vector.broadcast %cst_38 : f32 to vector<32x256xf32>
    %49 = arith.maximumf %47, %48 : vector<32x256xf32>
    %cst_39 = arith.constant 0.000000e+00 : bf16
    %50 = vector.broadcast %cst_39 : bf16 to vector<2x1x256xbf16>
    %c0_40 = arith.constant 0 : index
    %c0_41 = arith.constant 0 : index
    %c0_42 = arith.constant 0 : index
    %51 = vector.load %arg11[%c0_40, %c0_41, %c0_42] : memref<2x18x256xbf16, #tpu.memory_space<vmem>>, vector<2x1x256xbf16>
    tpu.vector_store %arg11[%c0_40, %c0_41, %c0_42], %50 {strides = array<i32>} : memref<2x18x256xbf16, #tpu.memory_space<vmem>>, vector<2x1x256xbf16>,
    %c0_43 = arith.constant 0 : index
    %c17 = arith.constant 17 : index
    %c0_44 = arith.constant 0 : index
    %52 = vector.load %arg11[%c0_43, %c17, %c0_44] : memref<2x18x256xbf16, #tpu.memory_space<vmem>>, vector<2x1x256xbf16>
    tpu.vector_store %arg11[%c0_43, %c17, %c0_44], %50 {strides = array<i32>} : memref<2x18x256xbf16, #tpu.memory_space<vmem>>, vector<2x1x256xbf16>,
    %53 = arith.truncf %49 : vector<32x256xf32> to vector<32x256xbf16>
    %54 = vector.shape_cast %53 : vector<32x256xbf16> to vector<2x16x256xbf16>
    %c0_45 = arith.constant 0 : index
    %c1_46 = arith.constant 1 : index
    %c0_47 = arith.constant 0 : index
    %55 = vector.load %arg11[%c0_45, %c1_46, %c0_47] : memref<2x18x256xbf16, #tpu.memory_space<vmem>>, vector<2x16x256xbf16>
    tpu.vector_store %arg11[%c0_45, %c1_46, %c0_47], %54 {strides = array<i32>} : memref<2x18x256xbf16, #tpu.memory_space<vmem>>, vector<2x16x256xbf16>,
    %c0_48 = arith.constant 0 : index
    %c0_49 = arith.constant 0 : index
    %c0_50 = arith.constant 0 : index
    %56 = vector.load %arg11[%c0_48, %c0_49, %c0_50] : memref<2x18x256xbf16, #tpu.memory_space<vmem>>, vector<2x16x256xbf16>
    %57 = vector.shape_cast %56 : vector<2x16x256xbf16> to vector<32x256xbf16>
    %c0_51 = arith.constant 0 : index
    %c0_52 = arith.constant 0 : index
    %c0_53 = arith.constant 0 : index
    %58 = vector.load %arg3[%c0_51, %c0_52, %c0_53] : memref<3x256x256xbf16, #tpu.memory_space<vmem>>, vector<1x256x256xbf16>
    %59 = vector.shape_cast %58 : vector<1x256x256xbf16> to vector<256x256xbf16>
    %cst_54 = arith.constant dense<0.000000e+00> : vector<32x256xf32>
    %60 = tpu.matmul %57, %59, %cst_54 {dimension_numbers = #tpu.dot_dimension_numbers<[1], [0], [0], [1], [0, 0, 1, 1], [], []>} : vector<32x256xbf16>, vector<256x256xbf16>, vector<32x256xf32> -> vector<32x256xf32>
    %c0_55 = arith.constant 0 : index
    %c1_56 = arith.constant 1 : index
    %c0_57 = arith.constant 0 : index
    %61 = vector.load %arg11[%c0_55, %c1_56, %c0_57] : memref<2x18x256xbf16, #tpu.memory_space<vmem>>, vector<2x16x256xbf16>
    %62 = vector.shape_cast %61 : vector<2x16x256xbf16> to vector<32x256xbf16>
    %c1_58 = arith.constant 1 : index
    %c0_59 = arith.constant 0 : index
    %c0_60 = arith.constant 0 : index
    %63 = vector.load %arg3[%c1_58, %c0_59, %c0_60] : memref<3x256x256xbf16, #tpu.memory_space<vmem>>, vector<1x256x256xbf16>
    %64 = vector.shape_cast %63 : vector<1x256x256xbf16> to vector<256x256xbf16>
    %cst_61 = arith.constant dense<0.000000e+00> : vector<32x256xf32>
    %65 = tpu.matmul %62, %64, %cst_61 {dimension_numbers = #tpu.dot_dimension_numbers<[1], [0], [0], [1], [0, 0, 1, 1], [], []>} : vector<32x256xbf16>, vector<256x256xbf16>, vector<32x256xf32> -> vector<32x256xf32>
    %66 = arith.addf %60, %65 : vector<32x256xf32>
    %c0_62 = arith.constant 0 : index
    %c2_63 = arith.constant 2 : index
    %c0_64 = arith.constant 0 : index
    %67 = vector.load %arg11[%c0_62, %c2_63, %c0_64] : memref<2x18x256xbf16, #tpu.memory_space<vmem>>, vector<2x16x256xbf16>
    %68 = vector.shape_cast %67 : vector<2x16x256xbf16> to vector<32x256xbf16>
    %c2_65 = arith.constant 2 : index
    %c0_66 = arith.constant 0 : index
    %c0_67 = arith.constant 0 : index
    %69 = vector.load %arg3[%c2_65, %c0_66, %c0_67] : memref<3x256x256xbf16, #tpu.memory_space<vmem>>, vector<1x256x256xbf16>
    %70 = vector.shape_cast %69 : vector<1x256x256xbf16> to vector<256x256xbf16>
    %cst_68 = arith.constant dense<0.000000e+00> : vector<32x256xf32>
    %71 = tpu.matmul %68, %70, %cst_68 {dimension_numbers = #tpu.dot_dimension_numbers<[1], [0], [0], [1], [0, 0, 1, 1], [], []>} : vector<32x256xbf16>, vector<256x256xbf16>, vector<32x256xf32> -> vector<32x256xf32>
    %72 = arith.addf %66, %71 : vector<32x256xf32>
    %cst_69 = arith.constant dense<0.000000e+00> : vector<256xf32>
    %73 = vector.multi_reduction <add>, %72, %cst_69 [0] : vector<32x256xf32> to vector<256xf32>
    %74 = vector.shape_cast %73 : vector<256xf32> to vector<1x256xf32>
    %75 = arith.mulf %72, %72 : vector<32x256xf32>
    %cst_70 = arith.constant dense<0.000000e+00> : vector<256xf32>
    %76 = vector.multi_reduction <add>, %75, %cst_70 [0] : vector<32x256xf32> to vector<256xf32>
    %77 = vector.shape_cast %76 : vector<256xf32> to vector<1x256xf32>
    %c0_71 = arith.constant 0 : index
    %c0_72 = arith.constant 0 : index
    %78 = vector.load %arg8[%c0_71, %c0_72] : memref<256x16xf32, #tpu.memory_space<vmem>>, vector<256x16xf32>
    %cst_73 = arith.constant dense<0.000000e+00> : vector<1x16xf32>
    %79 = tpu.matmul %74, %78, %cst_73 {dimension_numbers = #tpu.dot_dimension_numbers<[1], [0], [0], [1], [0, 0, 1, 1], [], []>} : vector<1x256xf32>, vector<256x16xf32>, vector<1x16xf32> -> vector<1x16xf32>
    %cst_74 = arith.constant 0.001953125 : f32
    %80 = vector.broadcast %cst_74 : f32 to vector<1x16xf32>
    %81 = arith.mulf %79, %80 : vector<1x16xf32>
    %c0_75 = arith.constant 0 : index
    %c0_76 = arith.constant 0 : index
    %82 = vector.load %arg8[%c0_75, %c0_76] : memref<256x16xf32, #tpu.memory_space<vmem>>, vector<256x16xf32>
    %cst_77 = arith.constant dense<0.000000e+00> : vector<1x16xf32>
    %83 = tpu.matmul %77, %82, %cst_77 {dimension_numbers = #tpu.dot_dimension_numbers<[1], [0], [0], [1], [0, 0, 1, 1], [], []>} : vector<1x256xf32>, vector<256x16xf32>, vector<1x16xf32> -> vector<1x16xf32>
    %cst_78 = arith.constant 0.001953125 : f32
    %84 = vector.broadcast %cst_78 : f32 to vector<1x16xf32>
    %85 = arith.mulf %83, %84 : vector<1x16xf32>
    %86 = arith.mulf %81, %81 : vector<1x16xf32>
    %87 = arith.subf %85, %86 : vector<1x16xf32>
    %c0_79 = arith.constant 0 : index
    %c0_80 = arith.constant 0 : index
    %88 = vector.load %arg6[%c0_79, %c0_80] : memref<1x16xf32, #tpu.memory_space<vmem>>, vector<1x16xf32>
    %cst_81 = arith.constant 9.99999974E-6 : f32
    %89 = vector.broadcast %cst_81 : f32 to vector<1x16xf32>
    %90 = arith.addf %87, %89 : vector<1x16xf32>
    %91 = math.rsqrt %90 : vector<1x16xf32>
    %92 = arith.mulf %88, %91 : vector<1x16xf32>
    %c0_82 = arith.constant 0 : index
    %c0_83 = arith.constant 0 : index
    %93 = vector.load %arg7[%c0_82, %c0_83] : memref<1x16xf32, #tpu.memory_space<vmem>>, vector<1x16xf32>
    %94 = arith.mulf %81, %92 : vector<1x16xf32>
    %95 = arith.subf %93, %94 : vector<1x16xf32>
    %c0_84 = arith.constant 0 : index
    %c0_85 = arith.constant 0 : index
    %96 = vector.load %arg9[%c0_84, %c0_85] : memref<16x256xf32, #tpu.memory_space<vmem>>, vector<16x256xf32>
    %cst_86 = arith.constant dense<0.000000e+00> : vector<1x256xf32>
    %97 = tpu.matmul %92, %96, %cst_86 {dimension_numbers = #tpu.dot_dimension_numbers<[1], [0], [0], [1], [0, 0, 1, 1], [], []>} : vector<1x16xf32>, vector<16x256xf32>, vector<1x256xf32> -> vector<1x256xf32>
    %c0_87 = arith.constant 0 : index
    %c0_88 = arith.constant 0 : index
    %98 = vector.load %arg9[%c0_87, %c0_88] : memref<16x256xf32, #tpu.memory_space<vmem>>, vector<16x256xf32>
    %cst_89 = arith.constant dense<0.000000e+00> : vector<1x256xf32>
    %99 = tpu.matmul %95, %98, %cst_89 {dimension_numbers = #tpu.dot_dimension_numbers<[1], [0], [0], [1], [0, 0, 1, 1], [], []>} : vector<1x16xf32>, vector<16x256xf32>, vector<1x256xf32> -> vector<1x256xf32>
    %100 = vector.broadcast %97 : vector<1x256xf32> to vector<32x256xf32>
    %101 = arith.mulf %72, %100 : vector<32x256xf32>
    %102 = vector.broadcast %99 : vector<1x256xf32> to vector<32x256xf32>
    %103 = arith.addf %101, %102 : vector<32x256xf32>
    %c0_90 = arith.constant 0 : index
    %c0_91 = arith.constant 0 : index
    %104 = vector.load %arg1[%c0_90, %c0_91] : memref<32x256xf32, #tpu.memory_space<vmem>>, vector<32x256xf32>
    %105 = arith.addf %103, %104 : vector<32x256xf32>
    %cst_92 = arith.constant 0.000000e+00 : f32
    %106 = vector.broadcast %cst_92 : f32 to vector<32x256xf32>
    %107 = arith.maximumf %105, %106 : vector<32x256xf32>
    %c0_93 = arith.constant 0 : index
    %c0_94 = arith.constant 0 : index
    %108 = vector.load %arg10[%c0_93, %c0_94] : memref<32x256xf32, #tpu.memory_space<vmem>>, vector<32x256xf32>
    tpu.vector_store %arg10[%c0_93, %c0_94], %107 {strides = array<i32>} : memref<32x256xf32, #tpu.memory_space<vmem>>, vector<32x256xf32>,
    return
  }
}

</mosaic_0001>

<bundles_post_ra>
// kernel: tpu_custom_call.1
= control target key start
LH: loop header
LB: loop body
LE: loop exit
PB: predicated region body
PF: predicated region fallthrough
CT: control target
= control target key end

     0   :  { %15 = vsyncpa [#allocation4], 0  ;;  %s4596_s0 = inlined_call_operand.vmem [shape: bf16[2,18,256], index: 0, kind: input, shape index: {}]   ;;  %s4597_s1 = inlined_call_operand.vmem [shape: f32[32,256], index: 1, kind: input, shape index: {}]   ;;  %s4598_s2 = inlined_call_operand.hbm [shape: bf16[3,256,256], index: 2, kind: input, shape index: {}]   ;;  %s4599_s3 = inlined_call_operand.hbm [shape: bf16[3,256,256], index: 3, kind: input, shape index: {}]   ;;  %s4600_s4 = inlined_call_operand.vmem [shape: f32[1,16], index: 4, kind: input, shape index: {}]   ;;  %s4601_s5 = inlined_call_operand.vmem [shape: f32[1,16], index: 5, kind: input, shape index: {}]   ;;  %s4602_s6 = inlined_call_operand.vmem [shape: f32[1,16], index: 6, kind: input, shape index: {}]   ;;  %s4603_s7 = inlined_call_operand.vmem [shape: f32[1,16], index: 7, kind: input, shape index: {}]   ;;  %s4604_s8 = inlined_call_operand.vmem [shape: f32[256,16], index: 8, kind: input, shape index: {}]   ;;  %s4605_s9 = inlined_call_operand.vmem [shape: f32[16,256], index: 9, kind: input, shape index: {}]   ;;  %s4606_s10 = inlined_call_operand.hbm [shape: f32[32,256], index: 10, kind: output, shape index: {}]  }
   0x1   :  { %16 = vsyncpa [#allocation7], 0 }
   0x2   :  { %17 = vsyncpa [#allocation5], 0  ;;  %s26_s15 = sshll.u32 %s4598_s2, 4  ;;  %s3778_s16 = smov [#allocation3]   ;;  %s27_s15 = int_to_ptr.hbm [resolvable:$true] %s26_s15 }
   0x3   :  { %s28_s17 = sshll.u32 %s3778_s16, 4  ;;  %s39_s20 = sshll.u32 %s4599_s3, 4  ;;  %s29_s17 = int_to_ptr.vmem [resolvable:$true] %s28_s17  ;;  %s40_s20 = int_to_ptr.hbm [resolvable:$true] %s39_s20 }
   0x4   :  { %s3779_s21 = smov 128   ;;  %s3780_s22 = smov 8  }
   0x5   :  { %34 = dma.hbm_to_vmem [thread:$0]  %s27_s15, 12288, %s29_s17, [#allocation4], %s3779_s21, %s3779_s21, %s3780_s22  }
   0x6   :  { %s3781_s23 = smov [#allocation6]  }
   0x7   :  { %s41_s24 = sshll.u32 %s3781_s23, 4  ;;  %s42_s24 = int_to_ptr.vmem [resolvable:$true] %s41_s24 }
   0x8   :  { %47 = dma.hbm_to_vmem [thread:$0]  %s40_s20, 12288, %s42_s24, [#allocation7], %s3779_s21, %s3779_s21, %s3780_s22  }
   0x9   :  { %3772 = dma.done.wait [#allocation4], 12288  }
   0xa   :  { %3773 = vsyncadd [#allocation4], 4294955008 }
   0xb   :  { %3774 = dma.done.wait [#allocation7], 12288  }
   0xc   :  { %3775 = vsyncadd [#allocation7], 4294955008  ;;  %v2735_v0 = vld [vmem:[#allocation3 + $0x170] sm:$0xf]  ;;  %v3540_v1 = vld [vmem:[#allocation3 + $0x174] sm:$0xf0] }
   0xd   :  { %v2799_v2 = vld [vmem:[#allocation3 + $0x1f0] sm:$0xf]  ;;  %v2736_v3 = vor.u32 %v3540_v1, %v2735_v0  ;;  %v3556_v4 = vld [vmem:[#allocation3 + $0x1f4] sm:$0xf0]  ;;  %v3539_v5 = vld [vmem:[#allocation3 + $0x174] sm:$0xf] }
   0xe   :  { %v2737_v6 = vld [vmem:[#allocation3 + $0x178] sm:$0xf0]  ;;  %v2800_v7 = vor.u32 %v3556_v4, %v2799_v2  ;;  %v3555_v9 = vld [vmem:[#allocation3 + $0x1f4] sm:$0xf]  ;;  %v2727_v11 = vld [vmem:[#allocation3 + $0x160] sm:$0xf] }
   0xf   :  { %v2740_v8 = vor.u32 %v3539_v5, %v2737_v6  ;;  %v2801_v10 = vld [vmem:[#allocation3 + $0x1f8] sm:$0xf0]  ;;  %367 = vmatpush.bf16.msra.mxu0 %v2736_v3  ;;  %v3538_v13 = vld [vmem:[#allocation3 + $0x164] sm:$0xf0]  ;;  %v2791_v14 = vld [vmem:[#allocation3 + $0x1e0] sm:$0xf] }
  0x10   :  { %v2804_v12 = vor.u32 %v3555_v9, %v2801_v10  ;;  %v3554_v15 = vld [vmem:[#allocation3 + $0x1e4] sm:$0xf0]  ;;  %386 = vmatpush.bf16.msra.mxu1 %v2800_v7  ;;  %v2728_v16 = vor.u32 %v3538_v13, %v2727_v11  ;;  %v3537_v18 = vld [vmem:[#allocation3 + $0x164] sm:$0xf]  ;;  %v2729_v19 = vld [vmem:[#allocation3 + $0x168] sm:$0xf0] }
  0x11   :  { %405 = vmatpush.bf16.msra.mxu2 %v2740_v8  ;;  %v2792_v17 = vor.u32 %v3554_v15, %v2791_v14  ;;  %v3553_v20 = vld [vmem:[#allocation3 + $0x1e4] sm:$0xf]  ;;  %v2732_v21 = vor.u32 %v3537_v18, %v2729_v19  ;;  %v2793_v22 = vld [vmem:[#allocation3 + $0x1e8] sm:$0xf0]  ;;  %v2719_v23 = vld [vmem:[#allocation3 + $0x150] sm:$0xf] }
  0x12   :  { %424 = vmatpush.bf16.msra.mxu3 %v2804_v12  ;;  %v3536_v24 = vld [vmem:[#allocation3 + $0x154] sm:$0xf0]  ;;  %v2796_v25 = vor.u32 %v3553_v20, %v2793_v22  ;;  %v2783_v26 = vld [vmem:[#allocation3 + $0x1d0] sm:$0xf]  ;;  %v3535_v28 = vld [vmem:[#allocation3 + $0x154] sm:$0xf] }
  0x13   :  { %v3552_v27 = vld [vmem:[#allocation3 + $0x1d4] sm:$0xf0]  ;;  %368 = vmatpush.bf16.msra.mxu0 %v2728_v16  ;;  %v2720_v29 = vor.u32 %v3536_v24, %v2719_v23  ;;  %v2721_v30 = vld [vmem:[#allocation3 + $0x158] sm:$0xf0]  ;;  %v3551_v31 = vld [vmem:[#allocation3 + $0x1d4] sm:$0xf] }
  0x14   :  { %v2785_v32 = vld [vmem:[#allocation3 + $0x1d8] sm:$0xf0]  ;;  %387 = vmatpush.bf16.msra.mxu1 %v2792_v17  ;;  %v2784_v33 = vor.u32 %v3552_v27, %v2783_v26  ;;  %v2724_v34 = vor.u32 %v3535_v28, %v2721_v30  ;;  %v2711_v35 = vld [vmem:[#allocation3 + $0x140] sm:$0xf]  ;;  %v3534_v36 = vld [vmem:[#allocation3 + $0x144] sm:$0xf0] }
  0x15   :  { %406 = vmatpush.bf16.msra.mxu2 %v2732_v21  ;;  %v2775_v37 = vld [vmem:[#allocation3 + $0x1c0] sm:$0xf]  ;;  %v2788_v38 = vor.u32 %v3551_v31, %v2785_v32  ;;  %v3550_v39 = vld [vmem:[#allocation3 + $0x1c4] sm:$0xf0]  ;;  %v3533_v40 = vld [vmem:[#allocation3 + $0x144] sm:$0xf]  ;;  %v2712_v44 = vor.u32 %v3534_v36, %v2711_v35 }
  0x16   :  { %425 = vmatpush.bf16.msra.mxu3 %v2796_v25  ;;  %v2713_v41 = vld [vmem:[#allocation3 + $0x148] sm:$0xf0]  ;;  %v3549_v42 = vld [vmem:[#allocation3 + $0x1c4] sm:$0xf]  ;;  %v2776_v45 = vor.u32 %v3550_v39, %v2775_v37  ;;  %v2703_v47 = vld [vmem:[#allocation3 + $0x130] sm:$0xf] }
  0x17   :  { %v2777_v43 = vld [vmem:[#allocation3 + $0x1c8] sm:$0xf0]  ;;  %369 = vmatpush.bf16.msra.mxu0 %v2720_v29  ;;  %v2716_v46 = vor.u32 %v3533_v40, %v2713_v41  ;;  %v3532_v48 = vld [vmem:[#allocation3 + $0x134] sm:$0xf0]  ;;  %v2767_v49 = vld [vmem:[#allocation3 + $0x1b0] sm:$0xf] }
  0x18   :  { %388 = vmatpush.bf16.msra.mxu1 %v2784_v33  ;;  %v2780_v50 = vor.u32 %v3549_v42, %v2777_v43  ;;  %v3548_v51 = vld [vmem:[#allocation3 + $0x1b4] sm:$0xf0]  ;;  %v3531_v52 = vld [vmem:[#allocation3 + $0x134] sm:$0xf]  ;;  %v2705_v53 = vld [vmem:[#allocation3 + $0x138] sm:$0xf0]  ;;  %v2704_v56 = vor.u32 %v3532_v48, %v2703_v47 }
  0x19   :  { %407 = vmatpush.bf16.msra.mxu2 %v2724_v34  ;;  %v3547_v54 = vld [vmem:[#allocation3 + $0x1b4] sm:$0xf]  ;;  %v2769_v55 = vld [vmem:[#allocation3 + $0x1b8] sm:$0xf0]  ;;  %vm107_vm0 = vsmask.f32 3328  ;;  %v2768_v57 = vor.u32 %v3548_v51, %v2767_v49  ;;  %v2708_v58 = vor.u32 %v3531_v52, %v2705_v53 }
  0x1a   :  { %426 = vmatpush.bf16.msra.mxu3 %v2788_v38  ;;  %v2695_v59 = vld [vmem:[#allocation3 + $0x120] sm:$0xf]  ;;  %v3530_v60 = vld [vmem:[#allocation3 + $0x124] sm:$0xf0]  ;;  %v2772_v62 = vor.u32 %v3547_v54, %v2769_v55  ;;  %v3529_v0 = vld [vmem:[#allocation3 + $0x124] sm:$0xf] }
  0x1b   :  { %370 = vmatpush.bf16.msra.mxu0 %v2712_v44  ;;  %v2759_v61 = vld [vmem:[#allocation3 + $0x1a0] sm:$0xf]  ;;  %v3546_v63 = vld [vmem:[#allocation3 + $0x1a4] sm:$0xf0]  ;;  %v2697_v1 = vld [vmem:[#allocation3 + $0x128] sm:$0xf0]  ;;  %v2696_v5 = vor.u32 %v3530_v60, %v2695_v59 }
  0x1c   :  { %389 = vmatpush.bf16.msra.mxu1 %v2776_v45  ;;  %v3545_v2 = vld [vmem:[#allocation3 + $0x1a4] sm:$0xf]  ;;  %v2761_v3 = vld [vmem:[#allocation3 + $0x1a8] sm:$0xf0]  ;;  %v2687_v4 = vld [vmem:[#allocation3 + $0x110] sm:$0xf]  ;;  %v2760_v9 = vor.u32 %v3546_v63, %v2759_v61  ;;  %v2700_v10 = vor.u32 %v3529_v0, %v2697_v1 }
  0x1d   :  { %408 = vmatpush.bf16.msra.mxu2 %v2716_v46  ;;  %v3528_v6 = vld [vmem:[#allocation3 + $0x114] sm:$0xf0]  ;;  %v2751_v7 = vld [vmem:[#allocation3 + $0x190] sm:$0xf]  ;;  %v3527_v11 = vld [vmem:[#allocation3 + $0x114] sm:$0xf]  ;;  %v2764_v14 = vor.u32 %v3545_v2, %v2761_v3 }
  0x1e   :  { %427 = vmatpush.bf16.msra.mxu3 %v2780_v50  ;;  %v3544_v8 = vld [vmem:[#allocation3 + $0x194] sm:$0xf0]  ;;  %v2689_v12 = vld [vmem:[#allocation3 + $0x118] sm:$0xf0]  ;;  %v3543_v13 = vld [vmem:[#allocation3 + $0x194] sm:$0xf]  ;;  %v2688_v24 = vor.u32 %v3528_v6, %v2687_v4 }
  0x1f   :  { %371 = vmatpush.bf16.msra.mxu0 %v2704_v56  ;;  %v2753_v15 = vld [vmem:[#allocation3 + $0x198] sm:$0xf0]  ;;  %v69_v16 = vld [vmem:[%s4596_s0] sm:$0xff]  ;;  %vm108_vm1 = vsmask.f32 7440  ;;  %v2752_v25 = vor.u32 %v3544_v8, %v2751_v7  ;;  %v2692_v32 = vor.u32 %v3527_v11, %v2689_v12  ;;  %v71_v59 = vld [vmem:[%s4596_s0 + $0x18] sm:$0xff] }
  0x20   :  { %390 = vmatpush.bf16.msra.mxu1 %v2768_v57  ;;  %v3852_v17 = vld [vmem:[%s4596_s0 + $0x8] sm:$0xff]  ;;  %v2679_v18 = vld [vmem:[#allocation3 + $0x100] sm:$0xf]  ;;  %v3526_v19 = vld [vmem:[#allocation3 + $0x104] sm:$0xf0]  ;;  %v111_v21 = vshrl.u32 %v69_v16, 16  ;;  %v2756_v37 = vor.u32 %v3543_v13, %v2753_v15 }
  0x21   :  { %409 = vmatpush.bf16.msra.mxu2 %v2708_v58  ;;  %v3857_v20 = vld [vmem:[%s4596_s0 + $0x10] sm:$0x11]  ;;  %v114_v22 = vshll.u32 %v69_v16, 16  ;;  %v120_v23 = vshll.u32 %v3852_v17, 16  ;;  %v3542_v27 = vld [vmem:[#allocation3 + $0x184] sm:$0xf0]  ;;  %vm3864_vm2 = vmor %vm107_vm0, %vm108_vm1  ;;  %v2680_v46 = vor.u32 %v3526_v19, %v2679_v18 }
  0x22   :  { %428 = vmatpush.bf16.msra.mxu3 %v2772_v62  ;;  %v2743_v26 = vld [vmem:[#allocation3 + $0x180] sm:$0xf]  ;;  %v3525_v28 = vld [vmem:[#allocation3 + $0x104] sm:$0xf]  ;;  %v2681_v29 = vld [vmem:[#allocation3 + $0x108] sm:$0xf0] }
  0x23   :  { %372 = vmatpush.bf16.msra.mxu0 %v2696_v5  ;;  %v124_v30 = vshrl.u32 %v3852_v17, 16  ;;  %v130_v31 = vshll.u32 %v3857_v20, 16  ;;  %v3541_v33 = vld [vmem:[#allocation3 + $0x184] sm:$0xf]  ;;  %v113_v34 = vrot.slane %v111_v21, 4  ;;  %v116_v35 = vrot.slane %v114_v22, 5 }
  0x24   :  { %391 = vmatpush.bf16.msra.mxu1 %v2760_v9  ;;  %v122_v36 = vrot.slane %v120_v23, 5  ;;  %v2745_v38 = vld [vmem:[#allocation3 + $0x188] sm:$0xf0]  ;;  %v3507_v40 = vld [vmem:[#allocation3 + $0x74] sm:$0xf]  ;;  %v2744_v51 = vor.u32 %v3542_v27, %v2743_v26  ;;  %v2684_v52 = vor.u32 %v3525_v28, %v2681_v29  ;;  %v135_v13 = vshrl.u32 %v71_v59, 16 }
  0x25   :  { %410 = vmatpush.bf16.msra.mxu2 %v2700_v10  ;;  %v126_v39 = vrot.slane %v124_v30, 4  ;;  %v117_v42 = vor.u32 %v116_v35, %v113_v34  ;;  %v132_v43 = vrot.slane %v130_v31, 5  ;;  %v2881_v44 = vld [vmem:[#allocation3 + $0x78] sm:$0xf0]  ;;  %v3523_v45 = vld [vmem:[#allocation3 + $0xf4] sm:$0xf]  ;;  %v2748_v56 = vor.u32 %v3541_v33, %v2745_v38 }
  0x26   :  { %429 = vmatpush.bf16.msra.mxu3 %v2764_v14  ;;  %v2945_v48 = vld [vmem:[#allocation3 + $0xf8] sm:$0xf0]  ;;  %v2879_v49 = vld [vmem:[#allocation3 + $0x70] sm:$0xf]  ;;  %v3508_v50 = vld [vmem:[#allocation3 + $0x74] sm:$0xf0]  ;;  %v2884_v58 = vor.u32 %v3507_v40, %v2881_v44 }
  0x27   :  { %373 = vmatpush.bf16.msra.mxu0 %v2688_v24  ;;  %v127_v47 = vor.u32 %v126_v39, %v122_v36  ;;  %v118_v53 = vrot.slane %v117_v42, 4  ;;  %v2943_v54 = vld [vmem:[#allocation3 + $0xf0] sm:$0xf]  ;;  %v3524_v55 = vld [vmem:[#allocation3 + $0xf4] sm:$0xf0]  ;;  %v2948_v61 = vor.u32 %v3523_v45, %v2945_v48  ;;  %v2880_v62 = vor.u32 %v3508_v50, %v2879_v49  ;;  %s3782_s28 = smov [#allocation8]  }
  0x28   :  { %392 = vmatpush.bf16.msra.mxu1 %v2752_v25  ;;  %v3505_v63 = vld [vmem:[#allocation3 + $0x64] sm:$0xf]  ;;  %v2873_v0 = vld [vmem:[#allocation3 + $0x68] sm:$0xf0]  ;;  %v2944_v5 = vor.u32 %v3524_v55, %v2943_v54  ;;  %v2871_v7 = vld [vmem:[#allocation3 + $0x60] sm:$0xf] }
  0x29   :  { %411 = vmatpush.bf16.msra.mxu2 %v2692_v32  ;;  %v128_v57 = vrot.slane %v127_v47, 4  ;;  %v123_v60 = vsel %vm3864_vm2, %v118_v53, %v122_v36  ;;  %v3521_v1 = vld [vmem:[#allocation3 + $0xe4] sm:$0xf]  ;;  %v2937_v6 = vld [vmem:[#allocation3 + $0xe8] sm:$0xf0]  ;;  %v138_v14 = vshll.u32 %v71_v59, 16  ;;  %v2876_v15 = vor.u32 %v3505_v63, %v2873_v0 }
  0x2a   :  { %430 = vmatpush.bf16.msra.mxu3 %v2756_v37  ;;  %v191_v3 = vunpack.c.l.b16 %v123_v60  ;;  %v192_v4 = vunpack.c.h.b16 %v123_v60  ;;  %v3506_v8 = vld [vmem:[#allocation3 + $0x64] sm:$0xf0]  ;;  %v2935_v11 = vld [vmem:[#allocation3 + $0xe0] sm:$0xf]  ;;  %v3503_v16 = vld [vmem:[#allocation3 + $0x54] sm:$0xf]  ;;  %v2940_v22 = vor.u32 %v3521_v1, %v2937_v6 }
  0x2b   :  { %374 = vmatpush.bf16.msra.mxu0 %v2680_v46  ;;  %v133_v2 = vsel %vm3864_vm2, %v128_v57, %v132_v43  ;;  %v3522_v12 = vld [vmem:[#allocation3 + $0xe4] sm:$0xf0]  ;;  %v3878_v18 = vld [vmem:[%s4596_s0 + $0x20] sm:$0xff]  ;;  %v2865_v23 = vld [vmem:[#allocation3 + $0x58] sm:$0xf0]  ;;  %v2872_v26 = vor.u32 %v3506_v8, %v2871_v7  ;;  %v137_v33 = vrot.slane %v135_v13, 4 }
  0x2c   :  { %393 = vmatpush.bf16.msra.mxu1 %v2744_v51  ;;  %v193_v9 = vunpack.c.l.b16 %v133_v2  ;;  %v194_v10 = vunpack.c.h.b16 %v133_v2  ;;  %v3519_v24 = vld [vmem:[#allocation3 + $0xd4] sm:$0xf]  ;;  %v2929_v25 = vld [vmem:[#allocation3 + $0xd8] sm:$0xf0]  ;;  %v2936_v27 = vor.u32 %v3522_v12, %v2935_v11  ;;  %v2863_v28 = vld [vmem:[#allocation3 + $0x50] sm:$0xf]  ;;  %v2868_v39 = vor.u32 %v3503_v16, %v2865_v23 }
  0x2d   :  { %412 = vmatpush.bf16.msra.mxu2 %v2684_v52  ;;  %v3504_v29 = vld [vmem:[#allocation3 + $0x54] sm:$0xf0]  ;;  %v2927_v30 = vld [vmem:[#allocation3 + $0xd0] sm:$0xf]  ;;  %v140_v34 = vrot.slane %v138_v14, 5  ;;  %v144_v36 = vshll.u32 %v3878_v18, 16  ;;  %v2932_v40 = vor.u32 %v3519_v24, %v2929_v25 }
  0x2e   :  { %431 = vmatpush.bf16.msra.mxu3 %v2748_v56  ;;  %v199_v19 = vpack.c.b16 %v193_v9, %v191_v3  ;;  %v200_v21 = vpack.c.b16 %v194_v10, %v192_v4  ;;  %v3520_v31 = vld [vmem:[#allocation3 + $0xd4] sm:$0xf0]  ;;  %v3501_v35 = vld [vmem:[#allocation3 + $0x44] sm:$0xf]  ;;  %v148_v37 = vshrl.u32 %v3878_v18, 16  ;;  %v2864_v46 = vor.u32 %v3504_v29, %v2863_v28  ;;  %s2663_s11 = sshll.u32 %s4606_s10, 4  ;;  %s2664_s11 = int_to_ptr.hbm [resolvable:$true] %s2663_s11 }
  0x2f   :  { %623 = vmatpush.bf16.msrb.mxu0 %v2880_v62  ;;  %v3883_v32 = vld [vmem:[%s4596_s0 + $0x28] sm:$0x11]  ;;  %v2857_v42 = vld [vmem:[#allocation3 + $0x48] sm:$0xf0]  ;;  %v3517_v43 = vld [vmem:[#allocation3 + $0xc4] sm:$0xf]  ;;  %v141_v45 = vor.u32 %v140_v34, %v137_v33  ;;  %v2928_v47 = vor.u32 %v3520_v31, %v2927_v30 }
  0x30   :  { %642 = vmatpush.bf16.msrb.mxu1 %v2944_v5  ;;  %375 = vmatmul.bf16.vlgmr.msra.gmra.mxu0 %v199_v19  ;;  %v154_v38 = vshll.u32 %v3883_v32, 16  ;;  %v2921_v44 = vld [vmem:[#allocation3 + $0xc8] sm:$0xf0]  ;;  %v2855_v48 = vld [vmem:[#allocation3 + $0x40] sm:$0xf]  ;;  %v146_v50 = vrot.slane %v144_v36, 5  ;;  %v2860_v57 = vor.u32 %v3501_v35, %v2857_v42 }
  0x31   :  { %661 = vmatpush.bf16.msrb.mxu2 %v2884_v58  ;;  %394 = vmatmul.bf16.vlgmr.msra.gmra.mxu1 %v200_v21  ;;  %v3502_v49 = vld [vmem:[#allocation3 + $0x44] sm:$0xf0]  ;;  %v150_v51 = vrot.slane %v148_v37, 4  ;;  %v2919_v52 = vld [vmem:[#allocation3 + $0xc0] sm:$0xf]  ;;  %v142_v54 = vrot.slane %v141_v45, 4  ;;  %v2924_v58 = vor.u32 %v3517_v43, %v2921_v44 }
  0x32   :  { %680 = vmatpush.bf16.msrb.mxu3 %v2948_v61  ;;  %413 = vmatmul.bf16.vlgmr.msra.gmra.mxu2 %v199_v19  ;;  %v3518_v53 = vld [vmem:[#allocation3 + $0xc4] sm:$0xf0]  ;;  %v156_v56 = vrot.slane %v154_v38, 5  ;;  %v3499_v60 = vld [vmem:[#allocation3 + $0x34] sm:$0xf]  ;;  %v2856_v63 = vor.u32 %v3502_v49, %v2855_v48  ;;  %vm705_vm3 = vcmask 1042432  }
  0x33   :  { %432 = vmatmul.bf16.vlgmr.msra.gmra.mxu3 %v200_v21  ;;  %624 = vmatpush.bf16.msrb.mxu0 %v2872_v26  ;;  %v151_v55 = vor.u32 %v150_v51, %v146_v50  ;;  %v147_v59 = vsel %vm3864_vm2, %v142_v54, %v146_v50  ;;  %v2849_v61 = vld [vmem:[#allocation3 + $0x38] sm:$0xf0]  ;;  %v3515_v62 = vld [vmem:[#allocation3 + $0xb4] sm:$0xf]  ;;  %v2920_v0 = vor.u32 %v3518_v53, %v2919_v52  ;;  %v2847_v3 = vld [vmem:[#allocation3 + $0x30] sm:$0xf] }
  0x34   :  { %643 = vmatpush.bf16.msrb.mxu1 %v2936_v27  ;;  %v2913_v2 = vld [vmem:[#allocation3 + $0xb8] sm:$0xf0]  ;;  %v195_v4 = vunpack.c.l.b16 %v147_v59  ;;  %v196_v5 = vunpack.c.h.b16 %v147_v59  ;;  %v3500_v6 = vld [vmem:[#allocation3 + $0x34] sm:$0xf0]  ;;  %v2911_v7 = vld [vmem:[#allocation3 + $0xb0] sm:$0xf]  ;;  %v2852_v12 = vor.u32 %v3499_v60, %v2849_v61 }
  0x35   :  { %662 = vmatpush.bf16.msrb.mxu2 %v2876_v15  ;;  %v152_v1 = vrot.slane %v151_v55, 4  ;;  %v3516_v8 = vld [vmem:[#allocation3 + $0xb4] sm:$0xf0]  ;;  %v2916_v13 = vor.u32 %v3515_v62, %v2913_v2  ;;  %v3497_v14 = vld [vmem:[#allocation3 + $0x24] sm:$0xf]  ;;  %v2848_v16 = vor.u32 %v3500_v6, %v2847_v3  ;;  %vm706_vm4 = vcmask 1046532  }
  0x36   :  { %681 = vmatpush.bf16.msrb.mxu3 %v2940_v22  ;;  %v2841_v15 = vld [vmem:[#allocation3 + $0x28] sm:$0xf0]  ;;  %v2912_v19 = vor.u32 %v3516_v8, %v2911_v7  ;;  %v3513_v21 = vld [vmem:[#allocation3 + $0xa4] sm:$0xf]  ;;  %v2839_v23 = vld [vmem:[#allocation3 + $0x20] sm:$0xf] }
  0x37   :  { %625 = vmatpush.bf16.msrb.mxu0 %v2864_v46  ;;  %v157_v9 = vsel %vm3864_vm2, %v152_v1, %v156_v56  ;;  %v2905_v22 = vld [vmem:[#allocation3 + $0xa8] sm:$0xf0]  ;;  %v3498_v26 = vld [vmem:[#allocation3 + $0x24] sm:$0xf0]  ;;  %v2903_v27 = vld [vmem:[#allocation3 + $0xa0] sm:$0xf]  ;;  %v2844_v29 = vor.u32 %v3497_v14, %v2841_v15 }
  0x38   :  { %644 = vmatpush.bf16.msrb.mxu1 %v2928_v47  ;;  %v197_v10 = vunpack.c.l.b16 %v157_v9  ;;  %v198_v11 = vunpack.c.h.b16 %v157_v9  ;;  %v3514_v28 = vld [vmem:[#allocation3 + $0xa4] sm:$0xf0]  ;;  %v2908_v30 = vor.u32 %v3513_v21, %v2905_v22  ;;  %v3495_v31 = vld [vmem:[#allocation3 + $0x14] sm:$0xf]  ;;  %v2833_v33 = vld [vmem:[#allocation3 + $0x18] sm:$0xf0]  ;;  %v2840_v34 = vor.u32 %v3498_v26, %v2839_v23 }
  0x39   :  { %663 = vmatpush.bf16.msrb.mxu2 %v2868_v39  ;;  %v2904_v35 = vor.u32 %v3514_v28, %v2903_v27  ;;  %v3511_v36 = vld [vmem:[#allocation3 + $0x94] sm:$0xf]  ;;  %v2897_v37 = vld [vmem:[#allocation3 + $0x98] sm:$0xf0]  ;;  %v2831_v38 = vld [vmem:[#allocation3 + $0x10] sm:$0xf]  ;;  %v2836_v44 = vor.u32 %v3495_v31, %v2833_v33 }
  0x3a   :  { %682 = vmatpush.bf16.msrb.mxu3 %v2932_v40  ;;  %v201_v24 = vpack.c.b16 %v197_v10, %v195_v4  ;;  %v202_v25 = vpack.c.b16 %v198_v11, %v196_v5  ;;  %v3496_v39 = vld [vmem:[#allocation3 + $0x14] sm:$0xf0]  ;;  %v2895_v40 = vld [vmem:[#allocation3 + $0x90] sm:$0xf]  ;;  %v3493_v43 = vld [vmem:[#allocation3 + $0x4] sm:$0xf]  ;;  %v2900_v45 = vor.u32 %v3511_v36, %v2897_v37 }
  0x3b   :  { %626 = vmatpush.bf16.msrb.mxu0 %v2856_v63  ;;  %v3512_v42 = vld [vmem:[#allocation3 + $0x94] sm:$0xf0]  ;;  %v2825_v46 = vld [vmem:[#allocation3 + $0x8] sm:$0xf0]  ;;  %v3509_v47 = vld [vmem:[#allocation3 + $0x84] sm:$0xf]  ;;  %v2832_v49 = vor.u32 %v3496_v39, %v2831_v38 }
  0x3c   :  { %645 = vmatpush.bf16.msrb.mxu1 %v2920_v0  ;;  %v2889_v48 = vld [vmem:[#allocation3 + $0x88] sm:$0xf0]  ;;  %v2896_v50 = vor.u32 %v3512_v42, %v2895_v40  ;;  %v2823_v51 = vld [vmem:[#allocation3] sm:$0xf]  ;;  %v3494_v52 = vld [vmem:[#allocation3 + $0x4] sm:$0xf0]  ;;  %v2828_v60 = vor.u32 %v3493_v43, %v2825_v46 }
  0x3d   :  { %664 = vmatpush.bf16.msrb.mxu2 %v2860_v57  ;;  %v2887_v53 = vld [vmem:[#allocation3 + $0x80] sm:$0xf]  ;;  %v3510_v54 = vld [vmem:[#allocation3 + $0x84] sm:$0xf0]  ;;  %v3571_v55 = vld [vmem:[#allocation3 + $0x274] sm:$0xf]  ;;  %v2892_v61 = vor.u32 %v3509_v47, %v2889_v48  ;;  %v2824_v1 = vor.u32 %v3494_v52, %v2823_v51 }
  0x3e   :  { %683 = vmatpush.bf16.msrb.mxu3 %v2924_v58  ;;  %v3011_v56 = vld [vmem:[#allocation3 + $0x278] sm:$0xf0]  ;;  %v3587_v57 = vld [vmem:[#allocation3 + $0x2f4] sm:$0xf]  ;;  %v3009_v59 = vld [vmem:[#allocation3 + $0x270] sm:$0xf]  ;;  %v2888_v2 = vor.u32 %v3510_v54, %v2887_v53 }
  0x3f   :  { %627 = vmatpush.bf16.msrb.mxu0 %v2848_v16  ;;  %v3075_v58 = vld [vmem:[#allocation3 + $0x2f8] sm:$0xf0]  ;;  %v3572_v62 = vld [vmem:[#allocation3 + $0x274] sm:$0xf0]  ;;  %v3073_v63 = vld [vmem:[#allocation3 + $0x2f0] sm:$0xf]  ;;  %v3014_v4 = vor.u32 %v3571_v55, %v3011_v56 }
  0x40   :  { %646 = vmatpush.bf16.msrb.mxu1 %v2912_v19  ;;  %380 = vmatmul.bf16.gmra.mxu0 %v201_v24  ;;  %v3588_v0 = vld [vmem:[#allocation3 + $0x2f4] sm:$0xf0]  ;;  %v2807_v3 = vld [vmem:[%s4596_s0] sm:$0xf]  ;;  %v3078_v5 = vor.u32 %v3587_v57, %v3075_v58  ;;  %v3489_v7 = vld [vmem:[%s4596_s0 + $0x4] sm:$0xf]  ;;  %v3010_v9 = vor.u32 %v3572_v62, %v3009_v59 }
  0x41   :  { %665 = vmatpush.bf16.msrb.mxu2 %v2852_v12  ;;  %399 = vmatmul.bf16.gmra.mxu1 %v202_v25  ;;  %v3490_v6 = vld [vmem:[%s4596_s0 + $0x4] sm:$0xf0]  ;;  %v2809_v8 = vld [vmem:[%s4596_s0 + $0x8] sm:$0xf0]  ;;  %v3074_v10 = vor.u32 %v3588_v0, %v3073_v63  ;;  %v3569_v11 = vld [vmem:[#allocation3 + $0x264] sm:$0xf] }
  0x42   :  { %684 = vmatpush.bf16.msrb.mxu3 %v2916_v13  ;;  %418 = vmatmul.bf16.gmra.mxu2 %v201_v24  ;;  %v3003_v12 = vld [vmem:[#allocation3 + $0x268] sm:$0xf0]  ;;  %v3585_v13 = vld [vmem:[#allocation3 + $0x2e4] sm:$0xf]  ;;  %v3001_v15 = vld [vmem:[#allocation3 + $0x260] sm:$0xf]  ;;  %v2808_v16 = vor.u32 %v3490_v6, %v2807_v3  ;;  %v2812_v19 = vor.u32 %v3489_v7, %v2809_v8 }
  0x43   :  { %437 = vmatmul.bf16.gmra.mxu3 %v202_v25  ;;  %628 = vmatpush.bf16.msrb.mxu0 %v2840_v34  ;;  %v3067_v14 = vld [vmem:[#allocation3 + $0x2e8] sm:$0xf0]  ;;  %v3570_v21 = vld [vmem:[#allocation3 + $0x264] sm:$0xf0]  ;;  %v3065_v22 = vld [vmem:[#allocation3 + $0x2e0] sm:$0xf]  ;;  %v3006_v26 = vor.u32 %v3569_v11, %v3003_v12 }
  0x44   :  { %647 = vmatpush.bf16.msrb.mxu1 %v2904_v35  ;;  %v3586_v23 = vld [vmem:[#allocation3 + $0x2e4] sm:$0xf0]  ;;  %v710_v24 = vrot.slane %v3852_v17, 5  ;;  %v713_v25 = vrot.slane %v3857_v20, 5  ;;  %v3070_v27 = vor.u32 %v3585_v13, %v3067_v14  ;;  %v3567_v28 = vld [vmem:[#allocation3 + $0x254] sm:$0xf]  ;;  %v3002_v31 = vor.u32 %v3570_v21, %v3001_v15  ;;  %vm3915_vm5 = vmor %vm705_vm3, %vm706_vm4 }
  0x45   :  { %666 = vmatpush.bf16.msrb.mxu2 %v2844_v29  ;;  %v2995_v29 = vld [vmem:[#allocation3 + $0x258] sm:$0xf0]  ;;  %v3066_v33 = vor.u32 %v3586_v23, %v3065_v22  ;;  %v2993_v35 = vld [vmem:[#allocation3 + $0x250] sm:$0xf]  ;;  %v3568_v36 = vld [vmem:[#allocation3 + $0x254] sm:$0xf0] }
  0x46   :  { %685 = vmatpush.bf16.msrb.mxu3 %v2908_v30  ;;  %v3583_v30 = vld [vmem:[#allocation3 + $0x2d4] sm:$0xf]  ;;  %v3059_v34 = vld [vmem:[#allocation3 + $0x2d8] sm:$0xf0]  ;;  %v3057_v37 = vld [vmem:[#allocation3 + $0x2d0] sm:$0xf] }
  0x47   :  { %629 = vmatpush.bf16.msrb.mxu0 %v2832_v49  ;;  %v3584_v38 = vld [vmem:[#allocation3 + $0x2d4] sm:$0xf0]  ;;  %v3565_v39 = vld [vmem:[#allocation3 + $0x244] sm:$0xf]  ;;  %v2987_v40 = vld [vmem:[#allocation3 + $0x248] sm:$0xf0]  ;;  %v2994_v49 = vor.u32 %v3568_v36, %v2993_v35 }
  0x48   :  { %648 = vmatpush.bf16.msrb.mxu1 %v2896_v50  ;;  %v3581_v42 = vld [vmem:[#allocation3 + $0x2c4] sm:$0xf]  ;;  %v3051_v43 = vld [vmem:[#allocation3 + $0x2c8] sm:$0xf0]  ;;  %v2985_v46 = vld [vmem:[#allocation3 + $0x240] sm:$0xf]  ;;  %v3058_v50 = vor.u32 %v3584_v38, %v3057_v37  ;;  %v2990_v54 = vor.u32 %v3565_v39, %v2987_v40 }
  0x49   :  { %667 = vmatpush.bf16.msrb.mxu2 %v2836_v44  ;;  %v2998_v44 = vor.u32 %v3567_v28, %v2995_v29  ;;  %v3566_v47 = vld [vmem:[#allocation3 + $0x244] sm:$0xf0]  ;;  %v3049_v48 = vld [vmem:[#allocation3 + $0x2c0] sm:$0xf]  ;;  %v3906_v52 = vld [vmem:[#allocation3 + $0x234] sm:$0xf]  ;;  %v3054_v58 = vor.u32 %v3581_v42, %v3051_v43 }
  0x4a   :  { %686 = vmatpush.bf16.msrb.mxu3 %v2900_v45  ;;  %v3062_v45 = vor.u32 %v3583_v30, %v3059_v34  ;;  %v3582_v51 = vld [vmem:[#allocation3 + $0x2c4] sm:$0xf0]  ;;  %v3908_v53 = vld [vmem:[#allocation3 + $0x238] sm:$0xf0]  ;;  %v3579_v55 = vld [vmem:[#allocation3 + $0x2b4] sm:$0xf]  ;;  %v2986_v59 = vor.u32 %v3566_v47, %v2985_v46 }
  0x4b   :  { %630 = vmatpush.bf16.msrb.mxu0 %v2824_v1  ;;  %v3043_v56 = vld [vmem:[#allocation3 + $0x2b8] sm:$0xf0]  ;;  %v3910_v57 = vld [vmem:[#allocation3 + $0x230] sm:$0xf]  ;;  %v3050_v62 = vor.u32 %v3582_v51, %v3049_v48  ;;  %v712_v1 = vrot.slane %v710_v24, 4  ;;  %v717_v3 = vrot.slane %v3878_v18, 5 }
  0x4c   :  { %649 = vmatpush.bf16.msrb.mxu1 %v2888_v2  ;;  %v700_v2 = vld [vmem:[%s4596_s0 + $0x18] sm:$0xee]  ;;  %v3041_v6 = vld [vmem:[#allocation3 + $0x2b0] sm:$0xf]  ;;  %v3580_v7 = vld [vmem:[#allocation3 + $0x2b4] sm:$0xf0] }
  0x4d   :  { %668 = vmatpush.bf16.msrb.mxu2 %v2828_v60  ;;  %v3564_v60 = vld [vmem:[#allocation3 + $0x234] sm:$0xf0]  ;;  %v2950_v8 = vrot.slane %v700_v2, 9  ;;  %v714_v12 = vsel %vm3915_vm5, %v712_v1, %v713_v25  ;;  %v719_v13 = vrot.slane %v717_v3, 4  ;;  %v3491_v14 = vld [vmem:[%s4596_s0 + $0x1c] sm:$0xf]  ;;  %v3042_v21 = vor.u32 %v3580_v7, %v3041_v6 }
  0x4e   :  { %687 = vmatpush.bf16.msrb.mxu3 %v2892_v61  ;;  %v699_v61 = vld [vmem:[%s4596_s0] sm:$0xee]  ;;  %v2978_v11 = vor.u32 %v3564_v60, %v3910_v57  ;;  %v758_v20 = vunpack.c.h.b16 %v714_v12  ;;  %v3561_v22 = vld [vmem:[#allocation3 + $0x224] sm:$0xf]  ;;  %v2971_v23 = vld [vmem:[#allocation3 + $0x228] sm:$0xf0] }
  0x4f   :  { %931 = vmatpush.bf16.msra.mxu0 %v3010_v9  ;;  %v2949_v0 = vrot.slane %v699_v61, 9  ;;  %v720_v9 = vrot.slane %v3883_v32, 5  ;;  %v3492_v32 = vld [vmem:[%s4596_s0 + $0x1c] sm:$0xf0]  ;;  %v2817_v17 = vld [vmem:[%s4596_s0 + $0x20] sm:$0xf0]  ;;  %v2974_v43 = vor.u32 %v3561_v22, %v2971_v23 }
  0x50   :  { %950 = vmatpush.bf16.msra.mxu1 %v3074_v10  ;;  %631 = vmatmul.bf16.vlgmr.msrb.gmra.mxu0 %v2808_v16  ;;  %v2815_v10 = vld [vmem:[%s4596_s0 + $0x18] sm:$0xf]  ;;  %v2969_v28 = vld [vmem:[#allocation3 + $0x220] sm:$0xf]  ;;  %v2820_v35 = vor.u32 %v3491_v14, %v2817_v17  ;;  %v2963_v46 = vld [vmem:[#allocation3 + $0x218] sm:$0xf0] }
  0x51   :  { %969 = vmatpush.bf16.msra.mxu2 %v3014_v4  ;;  %650 = vmatmul.bf16.vlgmr.msrb.gmra.mxu1 %v2812_v19  ;;  %v2982_v4 = vor.u32 %v3906_v52, %v3908_v53  ;;  %v711_v18 = vsel %vm3915_vm5, %v2949_v0, %v710_v24  ;;  %v718_v24 = vsel %vm3915_vm5, %v2950_v8, %v717_v3  ;;  %v3562_v36 = vld [vmem:[#allocation3 + $0x224] sm:$0xf0]  ;;  %v3033_v37 = vld [vmem:[#allocation3 + $0x2a0] sm:$0xf]  ;;  %v2961_v51 = vld [vmem:[#allocation3 + $0x210] sm:$0xf] }
  0x52   :  { %988 = vmatpush.bf16.msra.mxu3 %v3078_v5  ;;  %669 = vmatmul.bf16.vlgmr.msrb.gmra.mxu2 %v2808_v16  ;;  %v3046_v5 = vor.u32 %v3579_v55, %v3043_v56  ;;  %v755_v15 = vunpack.c.l.b16 %v711_v18  ;;  %v757_v16 = vunpack.c.l.b16 %v714_v12  ;;  %v721_v25 = vsel %vm3915_vm5, %v719_v13, %v720_v9  ;;  %v3578_v38 = vld [vmem:[#allocation3 + $0x2a4] sm:$0xf0]  ;;  %v3560_v53 = vld [vmem:[#allocation3 + $0x214] sm:$0xf0]  ;;  %v3019_v0 = vld [vmem:[#allocation3 + $0x288] sm:$0xf0] }
  0x53   :  { %688 = vmatmul.bf16.vlgmr.msrb.gmra.mxu3 %v2812_v19  ;;  %932 = vmatpush.bf16.msra.mxu0 %v3002_v31  ;;  %v756_v19 = vunpack.c.h.b16 %v711_v18  ;;  %v759_v31 = vunpack.c.l.b16 %v718_v24  ;;  %v2816_v34 = vor.u32 %v3492_v32, %v2815_v10  ;;  %v760_v40 = vunpack.c.h.b16 %v718_v24  ;;  %v3576_v55 = vld [vmem:[#allocation3 + $0x294] sm:$0xf0]  ;;  %v2953_v1 = vld [vmem:[#allocation3 + $0x200] sm:$0xf]  ;;  %v3558_v2 = vld [vmem:[#allocation3 + $0x204] sm:$0xf0] }
  0x54   :  { %951 = vmatpush.bf16.msra.mxu1 %v3066_v33  ;;  %v763_v29 = vpack.c.b16 %v757_v16, %v755_v15  ;;  %v761_v33 = vunpack.c.l.b16 %v721_v25  ;;  %v762_v42 = vunpack.c.h.b16 %v721_v25  ;;  %v2970_v47 = vor.u32 %v3562_v36, %v2969_v28  ;;  %v3017_v3 = vld [vmem:[#allocation3 + $0x280] sm:$0xf]  ;;  %v3684_v41 = vld [vmem:[#allocation6 + $0x2d4] sm:$0xf0]  ;;  %s3784_s12 = smov 16  }
  0x55   :  { %970 = vmatpush.bf16.msra.mxu2 %v3006_v26  ;;  %v3577_v26 = vld [vmem:[#allocation3 + $0x2a4] sm:$0xf]  ;;  %v764_v30 = vpack.c.b16 %v758_v20, %v756_v19  ;;  %v3034_v48 = vor.u32 %v3578_v38, %v3033_v37  ;;  %v2962_v60 = vor.u32 %v3560_v53, %v2961_v51  ;;  %v2954_v7 = vor.u32 %v3558_v2, %v2953_v1  ;;  %v1068_v51 = vld [vmem:[%s4604_s8 + $0x48] sm:$0xff]  ;;  %v1067_v53 = vld [vmem:[%s4604_s8 + $0x40] sm:$0xff] }
  0x56   :  { %989 = vmatpush.bf16.msra.mxu3 %v3070_v27  ;;  %v3035_v27 = vld [vmem:[#allocation3 + $0x2a8] sm:$0xf0]  ;;  %v765_v39 = vpack.c.b16 %v761_v33, %v759_v31  ;;  %v766_v52 = vpack.c.b16 %v762_v42, %v760_v40  ;;  %v1071_v40 = vld [vmem:[%s4604_s8 + $0x60] sm:$0xff]  ;;  %vm1195_vm9 = vcmask 130048   ;;  %vm1310_vm10 = vcmask 1040384  }
  0x57   :  { %933 = vmatpush.bf16.msra.mxu0 %v2994_v49  ;;  %v3575_v49 = vld [vmem:[#allocation3 + $0x294] sm:$0xf]  ;;  %v1074_v33 = vld [vmem:[%s4604_s8 + $0x78] sm:$0xff]  ;;  %vm1311_vm11 = vsmask.f32 256  ;;  %vm1313_vm12 = vcmask 1044484  }
  0x58   :  { %952 = vmatpush.bf16.msra.mxu1 %v3058_v50  ;;  %v3027_v50 = vld [vmem:[#allocation3 + $0x298] sm:$0xf0]  ;;  %v1090_v42 = vld [vmem:[%s4604_s8 + $0xf8] sm:$0xff]  ;;  %v1083_v1 = vld [vmem:[%s4604_s8 + $0xc0] sm:$0xff]  ;;  %vm1314_vm13 = vsmask.f32 4352 }
  0x59   :  { %971 = vmatpush.bf16.msra.mxu2 %v2998_v44  ;;  %v3038_v44 = vor.u32 %v3577_v26, %v3035_v27  ;;  %v3030_v57 = vor.u32 %v3575_v49, %v3027_v50  ;;  %v1063_v2 = vld [vmem:[%s4604_s8 + $0x20] sm:$0xff]  ;;  %vm1312_vm14 = vmand %vm1310_vm10, %vm1311_vm11  ;;  %vm1323_vm15 = vsmask.f32 7938  ;;  %vm1325_vm1 = vsmask.f32 7954 }
  0x5a   :  { %990 = vmatpush.bf16.msra.mxu3 %v3062_v45  ;;  %v3559_v45 = vld [vmem:[#allocation3 + $0x214] sm:$0xf]  ;;  %vm1315_vm0 = vmand %vm1313_vm12, %vm1314_vm13  ;;  %v3423_v63 = vld [vmem:[#allocation6 + $0x280] sm:$0xf] }
  0x5b   :  { %934 = vmatpush.bf16.msra.mxu0 %v2986_v59  ;;  %v2966_v56 = vor.u32 %v3559_v45, %v2963_v46  ;;  %v2955_v59 = vld [vmem:[#allocation3 + $0x208] sm:$0xf0]  ;;  %v1069_v45 = vld [vmem:[%s4604_s8 + $0x50] sm:$0xff]  ;;  %v1088_v46 = vld [vmem:[%s4604_s8 + $0xe8] sm:$0xff] }
  0x5c   :  { %953 = vmatpush.bf16.msra.mxu1 %v3050_v62  ;;  %v3573_v62 = vld [vmem:[#allocation3 + $0x284] sm:$0xf]  ;;  %vm4204_vm3 = vmor %vm1315_vm0, %vm1312_vm14 }
  0x5d   :  { %972 = vmatpush.bf16.msra.mxu2 %v2990_v54  ;;  %v3025_v54 = vld [vmem:[#allocation3 + $0x290] sm:$0xf]  ;;  %v3022_v6 = vor.u32 %v3573_v62, %v3019_v0  ;;  %v1064_v0 = vld [vmem:[%s4604_s8 + $0x28] sm:$0xff]  ;;  %vm1324_vm4 = vmand %vm1310_vm10, %vm1323_vm15  ;;  %vm1382_vm10 = vcmask 1047556  }
  0x5e   :  { %991 = vmatpush.bf16.msra.mxu3 %v3054_v58  ;;  %v3557_v58 = vld [vmem:[#allocation3 + $0x204] sm:$0xf]  ;;  %v3026_v61 = vor.u32 %v3576_v55, %v3025_v54  ;;  %v1086_v54 = vld [vmem:[%s4604_s8 + $0xd8] sm:$0xff]  ;;  %vm4232_vm14 = vmand %vm1382_vm10, %vm1325_vm1 }
  0x5f   :  { %935 = vmatpush.bf16.msra.mxu0 %v2978_v11  ;;  %v1066_v55 = vld [vmem:[%s4604_s8 + $0x38] sm:$0xff] }
  0x60   :  { %954 = vmatpush.bf16.msra.mxu1 %v3042_v21  ;;  %636 = vmatmul.bf16.gmra.mxu0 %v2816_v34 }
  0x61   :  { %973 = vmatpush.bf16.msra.mxu2 %v2982_v4  ;;  %655 = vmatmul.bf16.gmra.mxu1 %v2820_v35  ;;  %v3574_v4 = vld [vmem:[#allocation3 + $0x284] sm:$0xf0] }
  0x62   :  { %992 = vmatpush.bf16.msra.mxu3 %v3046_v5  ;;  %674 = vmatmul.bf16.gmra.mxu2 %v2816_v34  ;;  %v2958_v5 = vor.u32 %v3557_v58, %v2955_v59  ;;  %v3018_v8 = vor.u32 %v3574_v4, %v3017_v3  ;;  %v1073_v34 = vld [vmem:[%s4604_s8 + $0x70] sm:$0xff]  ;;  %v1084_v58 = vld [vmem:[%s4604_s8 + $0xc8] sm:$0xff]  ;;  %v1082_v3 = vld [vmem:[%s4604_s8 + $0xb8] sm:$0xff] }
  0x63   :  { %693 = vmatmul.bf16.gmra.mxu3 %v2820_v35  ;;  %936 = vmatpush.bf16.msra.mxu0 %v2970_v47  ;;  %v1062_v4 = vld [vmem:[%s4604_s8 + $0x18] sm:$0xff] }
  0x64   :  { %955 = vmatpush.bf16.msra.mxu1 %v3034_v48 }
  0x65   :  { %974 = vmatpush.bf16.msra.mxu2 %v2974_v43  ;;  %v1070_v43 = vld [vmem:[%s4604_s8 + $0x58] sm:$0xff] }
  0x66   :  { %993 = vmatpush.bf16.msra.mxu3 %v3038_v44  ;;  %v1089_v44 = vld [vmem:[%s4604_s8 + $0xf0] sm:$0xff] }
  0x67   :  { %937 = vmatpush.bf16.msra.mxu0 %v2962_v60 }
  0x68   :  { %956 = vmatpush.bf16.msra.mxu1 %v3026_v61 }
  0x69   :  { %975 = vmatpush.bf16.msra.mxu2 %v2966_v56  ;;  %v1085_v56 = vld [vmem:[%s4604_s8 + $0xd0] sm:$0xff] }
  0x6a   :  { %994 = vmatpush.bf16.msra.mxu3 %v3030_v57  ;;  %v1065_v57 = vld [vmem:[%s4604_s8 + $0x30] sm:$0xff] }
  0x6b   :  { %938 = vmatpush.bf16.msra.mxu0 %v2954_v7  ;;  %v1080_v7 = vld [vmem:[%s4604_s8 + $0xa8] sm:$0xff] }
  0x6c   :  { %957 = vmatpush.bf16.msra.mxu1 %v3018_v8 }
  0x6d   :  { %976 = vmatpush.bf16.msra.mxu2 %v2958_v5  ;;  %v1081_v5 = vld [vmem:[%s4604_s8 + $0xb0] sm:$0xff] }
  0x6e   :  { %995 = vmatpush.bf16.msra.mxu3 %v3022_v6  ;;  %v1061_v6 = vld [vmem:[%s4604_s8 + $0x10] sm:$0xff] }
  0x6f   :  { %1091 = vmatpush.msrb.mxu0 %v1074_v33 }
  0x70   :  { %939 = vmatmul.bf16.vlgmr.msra.gmra.mxu0 %v763_v29  ;;  %1111 = vmatpush.msrb.mxu1 %v1090_v42 }
  0x71   :  { %958 = vmatmul.bf16.vlgmr.msra.gmra.mxu1 %v764_v30  ;;  %1132 = vmatpush.msrb.mxu2 %v1074_v33  ;;  %v1079_v33 = vld [vmem:[%s4604_s8 + $0xa0] sm:$0xff] }
  0x72   :  { %977 = vmatmul.bf16.vlgmr.msra.gmra.mxu2 %v763_v29  ;;  %1092 = vmatpush.msrb.mxu0 %v1073_v34 }
  0x73   :  { %996 = vmatmul.bf16.vlgmr.msra.gmra.mxu3 %v764_v30  ;;  %1133 = vmatpush.msrb.mxu2 %v1073_v34  ;;  %v1059_v34 = vld [vmem:[%s4604_s8] sm:$0xff] }
  0x74   :  { %1152 = vmatpush.msrb.mxu3 %v1090_v42  ;;  %1112 = vmatpush.msrb.mxu1 %v1089_v44  ;;  %v1077_v42 = vld [vmem:[%s4604_s8 + $0x90] sm:$0xff] }
  0x76   :  { %1153 = vmatpush.msrb.mxu3 %v1089_v44  ;;  %1113 = vmatpush.msrb.mxu1 %v1088_v46 }
  0x78   :  { %1154 = vmatpush.msrb.mxu3 %v1088_v46 }
  0x80   :  { %944 = vmatmul.bf16.gmra.mxu0 %v765_v39 }
  0x81   :  { %963 = vmatmul.bf16.gmra.mxu1 %v766_v52 }
  0x82   :  { %982 = vmatmul.bf16.gmra.mxu2 %v765_v39  ;;  %v1072_v39 = vld [vmem:[%s4604_s8 + $0x68] sm:$0xff] }
  0x83   :  { %1001 = vmatmul.bf16.gmra.mxu3 %v766_v52  ;;  %1093 = vmatpush.msrb.mxu0 %v1072_v39  ;;  %v1087_v52 = vld [vmem:[%s4604_s8 + $0xe0] sm:$0xff] }
  0x84   :  { %1134 = vmatpush.msrb.mxu2 %v1072_v39  ;;  %1114 = vmatpush.msrb.mxu1 %v1087_v52  ;;  %v1078_v39 = vld [vmem:[%s4604_s8 + $0x98] sm:$0xff] }
  0x85   :  { %1094 = vmatpush.msrb.mxu0 %v1071_v40  ;;  %1155 = vmatpush.msrb.mxu3 %v1087_v52 }
  0x86   :  { %1135 = vmatpush.msrb.mxu2 %v1071_v40  ;;  %1115 = vmatpush.msrb.mxu1 %v1086_v54 }
  0x87   :  { %1095 = vmatpush.msrb.mxu0 %v1070_v43  ;;  %1156 = vmatpush.msrb.mxu3 %v1086_v54 }
  0x88   :  { %1136 = vmatpush.msrb.mxu2 %v1070_v43  ;;  %1116 = vmatpush.msrb.mxu1 %v1085_v56 }
  0x89   :  { %1096 = vmatpush.msrb.mxu0 %v1069_v45  ;;  %1157 = vmatpush.msrb.mxu3 %v1085_v56 }
  0x8a   :  { %1137 = vmatpush.msrb.mxu2 %v1069_v45  ;;  %1117 = vmatpush.msrb.mxu1 %v1084_v58  ;;  %v1076_v45 = vld [vmem:[%s4604_s8 + $0x88] sm:$0xff] }
  0x8b   :  { %1097 = vmatpush.msrb.mxu0 %v1068_v51  ;;  %1158 = vmatpush.msrb.mxu3 %v1084_v58 }
  0x8c   :  { %1138 = vmatpush.msrb.mxu2 %v1068_v51  ;;  %1118 = vmatpush.msrb.mxu1 %v1083_v1 }
  0x8d   :  { %1098 = vmatpush.msrb.mxu0 %v1067_v53  ;;  %1159 = vmatpush.msrb.mxu3 %v1083_v1 }
  0x8e   :  { %1139 = vmatpush.msrb.mxu2 %v1067_v53  ;;  %1119 = vmatpush.msrb.mxu1 %v1082_v3 }
  0x8f   :  { %1099 = vmatpush.msrb.mxu0 %v1066_v55  ;;  %1160 = vmatpush.msrb.mxu3 %v1082_v3 }
  0x90   :  { %1140 = vmatpush.msrb.mxu2 %v1066_v55  ;;  %1120 = vmatpush.msrb.mxu1 %v1081_v5 }
  0x91   :  { %1100 = vmatpush.msrb.mxu0 %v1065_v57  ;;  %1161 = vmatpush.msrb.mxu3 %v1081_v5 }
  0x92   :  { %1141 = vmatpush.msrb.mxu2 %v1065_v57  ;;  %1121 = vmatpush.msrb.mxu1 %v1080_v7 }
  0x93   :  { %1101 = vmatpush.msrb.mxu0 %v1064_v0  ;;  %1162 = vmatpush.msrb.mxu3 %v1080_v7 }
  0x94   :  { %1142 = vmatpush.msrb.mxu2 %v1064_v0  ;;  %1122 = vmatpush.msrb.mxu1 %v1079_v33 }
  0x95   :  { %1102 = vmatpush.msrb.mxu0 %v1063_v2  ;;  %1163 = vmatpush.msrb.mxu3 %v1079_v33 }
  0x96   :  { %1143 = vmatpush.msrb.mxu2 %v1063_v2  ;;  %1123 = vmatpush.msrb.mxu1 %v1078_v39 }
  0x97   :  { %1103 = vmatpush.msrb.mxu0 %v1062_v4  ;;  %1164 = vmatpush.msrb.mxu3 %v1078_v39 }
  0x98   :  { %1144 = vmatpush.msrb.mxu2 %v1062_v4  ;;  %1124 = vmatpush.msrb.mxu1 %v1077_v42 }
  0x99   :  { %1104 = vmatpush.msrb.mxu0 %v1061_v6  ;;  %1165 = vmatpush.msrb.mxu3 %v1077_v42 }
  0x9a   :  { %1145 = vmatpush.msrb.mxu2 %v1061_v6  ;;  %1125 = vmatpush.msrb.mxu1 %v1076_v45 }
  0x9b   :  { %1166 = vmatpush.msrb.mxu3 %v1076_v45 }
  0xad   :  { %v376_v9 = vpop.f32.mrf.mxu0 }
  0xae   :  { %v395_v10 = vpop.f32.mrf.mxu1 }
  0xaf   :  { %v3953_v11 = vadd.f32 %v395_v10, %v376_v9 }
  0xb5   :  { %v414_v18 = vpop.f32.mrf.mxu2  ;;  %v3957_v32 = vpop.f32.mrf.mxu0 }
  0xb6   :  { %v433_v12 = vpop.f32.mrf.mxu3  ;;  %v3959_v14 = vpop.f32.mrf.mxu1 }
  0xb7   :  { %v3955_v13 = vadd.f32 %v433_v12, %v414_v18  ;;  %v1060_v12 = vld [vmem:[%s4604_s8 + $0x8] sm:$0xff]  ;;  %v398_v40 = vadd.f32 %v3959_v14, %v3957_v32  ;;  %v1075_v32 = vld [vmem:[%s4604_s8 + $0x80] sm:$0xff] }
  0xb8   :  { %1105 = vmatpush.msrb.mxu0 %v1060_v12  ;;  %1146 = vmatpush.msrb.mxu2 %v1060_v12 }
  0xb9   :  { %1126 = vmatpush.msrb.mxu1 %v1075_v32  ;;  %1167 = vmatpush.msrb.mxu3 %v1075_v32 }
  0xba   :  { %1106 = vmatpush.msrb.mxu0 %v1059_v34  ;;  %1147 = vmatpush.msrb.mxu2 %v1059_v34 }
  0xbd   :  { %v3961_v17 = vpop.f32.mrf.mxu2  ;;  %v3965_v16 = vpop.f32.mrf.mxu0 }
  0xbe   :  { %v3963_v15 = vpop.f32.mrf.mxu3  ;;  %v3967_v19 = vpop.f32.mrf.mxu1 }
  0xbf   :  { %v401_v43 = vadd.f32 %v3967_v19, %v3965_v16  ;;  %v436_v56 = vadd.f32 %v3963_v15, %v3961_v17 }
  0xc5   :  { %v3969_v20 = vpop.f32.mrf.mxu2  ;;  %v3973_v22 = vpop.f32.mrf.mxu0 }
  0xc6   :  { %v3971_v21 = vpop.f32.mrf.mxu3  ;;  %v3975_v23 = vpop.f32.mrf.mxu1 }
  0xc7   :  { %v439_v58 = vadd.f32 %v3971_v21, %v3969_v20 }
  0xcd   :  { %v3977_v24 = vpop.f32.mrf.mxu2  ;;  %v3981_v26 = vpop.f32.mrf.mxu0 }
  0xce   :  { %v3979_v25 = vpop.f32.mrf.mxu3  ;;  %v3983_v27 = vpop.f32.mrf.mxu1  ;;  %v633_v14 = vadd.f32 %v3981_v26, %v3953_v11  ;;  %v403_v11 = vadd.f32 %v3975_v23, %v3973_v22 }
  0xd0   :  { %v652_v26 = vadd.f32 %v3983_v27, %v633_v14  ;;  %v441_v27 = vadd.f32 %v3979_v25, %v3977_v24 }
  0xd5   :  { %v3985_v28 = vpop.f32.mrf.mxu2  ;;  %v3989_v30 = vpop.f32.mrf.mxu0 }
  0xd6   :  { %v3987_v29 = vpop.f32.mrf.mxu3  ;;  %v3991_v31 = vpop.f32.mrf.mxu1  ;;  %v635_v44 = vadd.f32 %v3989_v30, %v398_v40  ;;  %v671_v15 = vadd.f32 %v3985_v28, %v3955_v13 }
  0xd8   :  { %v654_v53 = vadd.f32 %v3991_v31, %v635_v44 }
  0xdd   :  { %v3999_v35 = vpop.f32.mrf.mxu2  ;;  %v4003_v37 = vpop.f32.mrf.mxu0 }
  0xde   :  { %v4001_v36 = vpop.f32.mrf.mxu3  ;;  %v4005_v38 = vpop.f32.mrf.mxu1  ;;  %v638_v46 = vadd.f32 %v4003_v37, %v401_v43  ;;  %v673_v31 = vadd.f32 %v3999_v35, %v436_v56 }
  0xe0   :  { %v657_v37 = vadd.f32 %v4005_v38, %v638_v46  ;;  %v692_v38 = vadd.f32 %v4001_v36, %v673_v31 }
  0xe5   :  { %v4028_v47 = vpop.f32.mrf.mxu2  ;;  %v4032_v49 = vpop.f32.mrf.mxu0 }
  0xe6   :  { %v4030_v48 = vpop.f32.mrf.mxu3  ;;  %v4034_v50 = vpop.f32.mrf.mxu1  ;;  %v676_v22 = vadd.f32 %v4028_v47, %v439_v58  ;;  %v690_v47 = vadd.f32 %v3987_v29, %v671_v15 }
  0xe8   :  { %v695_v36 = vadd.f32 %v4030_v48, %v676_v22 }
  0xed   :  { %v4060_v59 = vpop.f32.mrf.mxu2  ;;  %v940_v61 = vpop.f32.mrf.mxu0 }
  0xee   :  { %v4062_v60 = vpop.f32.mrf.mxu3  ;;  %v959_v62 = vpop.f32.mrf.mxu1 }
  0xef   :  { %v960_v54 = vadd.f32 %v959_v62, %v940_v61  ;;  %v640_v61 = vadd.f32 %v4032_v49, %v403_v11 }
  0xf1   :  { %v4130_v62 = vadd.f32 %v960_v54, %v652_v26  ;;  %v659_v49 = vadd.f32 %v4034_v50, %v640_v61  ;;  %v678_v50 = vadd.f32 %v4060_v59, %v441_v27 }
  0xf3   :  { %v1033_v13 = vmul.f32 %v4130_v62, %v4130_v62  ;;  %v697_v59 = vadd.f32 %v4062_v60, %v678_v50 }
  0xf5   :  { %v978_v8 = vpop.f32.mrf.mxu2  ;;  %v942_v10 = vpop.f32.mrf.mxu0 }
  0xf6   :  { %v997_v9 = vpop.f32.mrf.mxu3  ;;  %v961_v18 = vpop.f32.mrf.mxu1 }
  0xf7   :  { %v962_v51 = vadd.f32 %v961_v18, %v942_v10  ;;  %v998_v0 = vadd.f32 %v997_v9, %v978_v8 }
  0xf9   :  { %v4124_v57 = vadd.f32 %v962_v51, %v654_v53  ;;  %v4157_v8 = vadd.f32 %v998_v0, %v690_v47 }
  0xfb   :  { %v1035_v20 = vmul.f32 %v4124_v57, %v4124_v57  ;;  %v1015_v28 = vadd.f32 %v4124_v57, %v4130_v62  ;;  %v1034_v40 = vmul.f32 %v4157_v8, %v4157_v8 }
  0xfd   :  { %v980_v52 = vpop.f32.mrf.mxu2  ;;  %v945_v19 = vpop.f32.mrf.mxu0  ;;  %v1041_v5 = vadd.f32 %v1035_v20, %v1033_v13 }
  0xfe   :  { %v999_v16 = vpop.f32.mrf.mxu3  ;;  %v964_v30 = vpop.f32.mrf.mxu1 }
  0xff   :  { %v965_v55 = vadd.f32 %v964_v30, %v945_v19  ;;  %v1000_v23 = vadd.f32 %v999_v16, %v980_v52 }
 0x101   :  { %v4132_v17 = vadd.f32 %v965_v55, %v657_v37  ;;  %v4151_v4 = vadd.f32 %v1000_v23, %v692_v38 }
 0x103   :  { %v1037_v24 = vmul.f32 %v4132_v17, %v4132_v17  ;;  %v1016_v6 = vadd.f32 %v1015_v28, %v4132_v17  ;;  %v1036_v48 = vmul.f32 %v4151_v4, %v4151_v4  ;;  %v1024_v42 = vadd.f32 %v4151_v4, %v4157_v8  ;;  %v1191_v28 = vld [vmem:[%s4605_s9] sm:$0xff] }
 0x105   :  { %v983_v21 = vpop.f32.mrf.mxu2  ;;  %v947_v2 = vpop.f32.mrf.mxu0  ;;  %v1042_v10 = vadd.f32 %v1041_v5, %v1037_v24  ;;  %v1050_v14 = vadd.f32 %v1036_v48, %v1034_v40  ;;  %v1192_v24 = vld [vmem:[%s4605_s9 + $0x8] sm:$0xff]  ;;  %v1175_v40 = vld [vmem:[%s4600_s4] sm:$0x1] }
 0x106   :  { %v1002_v35 = vpop.f32.mrf.mxu3  ;;  %v966_v3 = vpop.f32.mrf.mxu1 }
 0x107   :  { %v1003_v1 = vadd.f32 %v1002_v35, %v983_v21  ;;  %v967_v25 = vadd.f32 %v966_v3, %v947_v2  ;;  %v1193_v2 = vld [vmem:[%s4605_s9 + $0x10] sm:$0xff]  ;;  %v1194_v3 = vld [vmem:[%s4605_s9 + $0x18] sm:$0xff] }
 0x108   :  { %1256 = vmatpush.msra.mxu2 %v1193_v2  ;;  %1276 = vmatpush.msra.mxu3 %v1194_v3 }
 0x109   :  { %v4155_v7 = vadd.f32 %v967_v25, %v659_v49  ;;  %v4159_v9 = vadd.f32 %v1003_v1, %v695_v36  ;;  %1213 = vmatpush.msra.mxu0 %v1193_v2  ;;  %1233 = vmatpush.msra.mxu1 %v1194_v3  ;;  %v3135_v2 = vld [vmem:[#allocation6 + $0x168] sm:$0xf0] }
 0x10a   :  { %1257 = vmatpush.msra.mxu2 %v1191_v28  ;;  %1277 = vmatpush.msra.mxu3 %v1192_v24 }
 0x10b   :  { %v1017_v18 = vadd.f32 %v1016_v6, %v4155_v7  ;;  %v1039_v29 = vmul.f32 %v4155_v7, %v4155_v7  ;;  %v1038_v43 = vmul.f32 %v4159_v9, %v4159_v9  ;;  %v1025_v46 = vadd.f32 %v1024_v42, %v4159_v9  ;;  %1214 = vmatpush.msra.mxu0 %v1191_v28  ;;  %v3199_v28 = vld [vmem:[#allocation6 + $0x1e8] sm:$0xf0] }
 0x10c   :  { %1234 = vmatpush.msra.mxu1 %v1192_v24 }
 0x10d   :  { %v1018_v12 = vrot.slane %v1017_v18, 4  ;;  %v1043_v33 = vadd.f32 %v1042_v10, %v1039_v29  ;;  %v985_v34 = vpop.f32.mrf.mxu2  ;;  %v1051_v16 = vadd.f32 %v1050_v14, %v1038_v43  ;;  %v3141_v14 = vld [vmem:[#allocation6 + $0x170] sm:$0xf] }
 0x10e   :  { %v1004_v39 = vpop.f32.mrf.mxu3 }
 0x10f   :  { %v1005_v44 = vadd.f32 %v1004_v39, %v985_v34  ;;  %v1019_v45 = vadd.f32 %v1018_v12, %v1017_v18  ;;  %v1044_v32 = vrot.slane %v1043_v33, 4 }
 0x111   :  { %v4174_v60 = vadd.f32 %v1005_v44, %v697_v59  ;;  %v1020_v51 = vrot.slane %v1019_v45, 2  ;;  %v1045_v52 = vadd.f32 %v1044_v32, %v1043_v33  ;;  %v1188_v44 = vld [vmem:[%s4601_s5] sm:$0x1] }
 0x113   :  { %v1026_v19 = vadd.f32 %v1025_v46, %v4174_v60  ;;  %v1040_v30 = vmul.f32 %v4174_v60, %v4174_v60  ;;  %v1021_v53 = vadd.f32 %v1020_v51, %v1019_v45  ;;  %v1046_v54 = vrot.slane %v1045_v52, 2  ;;  %v1317_v46 = vld [vmem:[#allocation2] sm:$0x11]  ;;  %v1320_v51 = vld [vmem:[#allocation2 + $0x18] sm:$0x11] }
 0x115   :  { %v1027_v55 = vrot.slane %v1026_v19, 4  ;;  %v1052_v56 = vadd.f32 %v1051_v16, %v1040_v30  ;;  %v1022_v11 = vrot.slane %v1021_v53, 1  ;;  %v1047_v26 = vadd.f32 %v1046_v54, %v1045_v52  ;;  %v1328_v16 = vld [vmem:[#allocation2 + $0x10] sm:$0x11]  ;;  %v3640_v54 = vld [vmem:[#allocation6 + $0x174] sm:$0xf0] }
 0x116   :  { %v1321_v30 = vsel %vm4204_vm3, 0, %v1320_v51 }
 0x117   :  { %v1028_v37 = vadd.f32 %v1027_v55, %v1026_v19  ;;  %v1053_v58 = vrot.slane %v1052_v56, 4  ;;  %v1023_v31 = vadd.f32 %v1022_v11, %v1021_v53  ;;  %v1048_v61 = vrot.slane %v1047_v26, 1  ;;  %v1331_v53 = vld [vmem:[#allocation2 + $0x28] sm:$0x11]  ;;  %1322 = vst [vmem:[#allocation2 + $0x18] sm:$0x11] %v1321_v30 }
 0x118   :  { %v1318_v19 = vsel %vm4204_vm3, 0, %v1317_v46  ;;  %v3142_v55 = vor.u32 %v3640_v54, %v3141_v14  ;;  %v3656_v11 = vld [vmem:[#allocation6 + $0x1f4] sm:$0xf0]  ;;  %v3119_v14 = vld [vmem:[#allocation6 + $0x148] sm:$0xf0] }
 0x119   :  { %v1029_v15 = vrot.slane %v1028_v37, 2  ;;  %v1054_v22 = vadd.f32 %v1053_v58, %v1052_v56  ;;  %1107 = vmatmul.f32.vlgmr.msrb.gmra.mxu0 %v1023_v31  ;;  %v1049_v23 = vadd.f32 %v1048_v61, %v1047_v26  ;;  %1319 = vst [vmem:[#allocation2] sm:$0x11] %v1318_v19  ;;  %v3205_v56 = vld [vmem:[#allocation6 + $0x1f0] sm:$0xf] }
 0x11a   :  { %v3206_v26 = vor.u32 %v3656_v11, %v3205_v56  ;;  %v3143_v58 = vld [vmem:[#allocation6 + $0x178] sm:$0xf0]  ;;  %1694 = vmatpush.bf16.msrb.mxu0 %v3142_v55  ;;  %v3649_v46 = vld [vmem:[#allocation6 + $0x1c4] sm:$0xf]  ;;  %v3183_v30 = vld [vmem:[#allocation6 + $0x1c8] sm:$0xf0] }
 0x11b   :  { %v1030_v27 = vadd.f32 %v1029_v15, %v1028_v37  ;;  %v1055_v20 = vrot.slane %v1054_v22, 2  ;;  %1148 = vmatmul.f32.vlgmr.msrb.gmra.mxu2 %v1049_v23  ;;  %v3639_v37 = vld [vmem:[#allocation6 + $0x174] sm:$0xf]  ;;  %v3207_v23 = vld [vmem:[#allocation6 + $0x1f8] sm:$0xf0]  ;;  %v3186_v54 = vor.u32 %v3649_v46, %v3183_v30 }
 0x11c   :  { %v3146_v15 = vor.u32 %v3639_v37, %v3143_v58  ;;  %v3632_v55 = vld [vmem:[#allocation6 + $0x134] sm:$0xf0]  ;;  %v3173_v56 = vld [vmem:[#allocation6 + $0x1b0] sm:$0xf]  ;;  %v3111_v37 = vld [vmem:[#allocation6 + $0x138] sm:$0xf0] }
 0x11d   :  { %v1031_v21 = vrot.slane %v1030_v27, 1  ;;  %v1056_v35 = vadd.f32 %v1055_v20, %v1054_v22  ;;  %v3655_v22 = vld [vmem:[#allocation6 + $0x1f4] sm:$0xf]  ;;  %v3133_v20 = vld [vmem:[#allocation6 + $0x160] sm:$0xf] }
 0x11e   :  { %1732 = vmatpush.bf16.msrb.mxu2 %v3146_v15  ;;  %v3648_v11 = vld [vmem:[#allocation6 + $0x1b4] sm:$0xf0]  ;;  %v3647_v58 = vld [vmem:[#allocation6 + $0x1b4] sm:$0xf]  ;;  %v3630_v15 = vld [vmem:[#allocation6 + $0x124] sm:$0xf0] }
 0x11f   :  { %v1032_v38 = vadd.f32 %v1031_v21, %v1030_v27  ;;  %v1057_v49 = vrot.slane %v1056_v35, 1  ;;  %v3210_v27 = vor.u32 %v3655_v22, %v3207_v23  ;;  %v3638_v21 = vld [vmem:[#allocation6 + $0x164] sm:$0xf0]  ;;  %v3174_v23 = vor.u32 %v3648_v11, %v3173_v56  ;;  %v3087_v46 = vld [vmem:[#allocation6 + $0x108] sm:$0xf0] }
 0x121   :  { %1127 = vmatmul.f32.vlgmr.msrb.gmra.mxu1 %v1032_v38  ;;  %v1058_v0 = vadd.f32 %v1057_v49, %v1056_v35  ;;  %v3134_v35 = vor.u32 %v3638_v21, %v3133_v20  ;;  %v3197_v38 = vld [vmem:[#allocation6 + $0x1e0] sm:$0xf]  ;;  %v3654_v49 = vld [vmem:[#allocation6 + $0x1e4] sm:$0xf0] }
 0x122   :  { %1713 = vmatpush.bf16.msrb.mxu1 %v3206_v26  ;;  %v3631_v26 = vld [vmem:[#allocation6 + $0x134] sm:$0xf]  ;;  %v3165_v21 = vld [vmem:[#allocation6 + $0x1a0] sm:$0xf] }
 0x123   :  { %1168 = vmatmul.f32.vlgmr.msrb.gmra.mxu3 %v1058_v0  ;;  %v3198_v0 = vor.u32 %v3654_v49, %v3197_v38  ;;  %1695 = vmatpush.bf16.msrb.mxu0 %v3134_v35  ;;  %v3646_v35 = vld [vmem:[#allocation6 + $0x1a4] sm:$0xf0]  ;;  %v3629_v38 = vld [vmem:[#allocation6 + $0x124] sm:$0xf]  ;;  %v3103_v49 = vld [vmem:[#allocation6 + $0x128] sm:$0xf0] }
 0x124   :  { %1751 = vmatpush.bf16.msrb.mxu3 %v3210_v27  ;;  %v3114_v27 = vor.u32 %v3631_v26, %v3111_v37  ;;  %v3641_v26 = vld [vmem:[#allocation6 + $0x184] sm:$0xf]  ;;  %v3151_v37 = vld [vmem:[#allocation6 + $0x188] sm:$0xf0] }
 0x126   :  { %1714 = vmatpush.bf16.msrb.mxu1 %v3198_v0  ;;  %v3645_v0 = vld [vmem:[#allocation6 + $0x1a4] sm:$0xf] }
 0x196   :  { %v1108_v13 = vpop.f32.mrf.mxu0 }
 0x19e   :  { %v1128_v1 = vpop.f32.mrf.mxu1  ;;  %v1149_v36 = vpop.f32.mrf.mxu2 }
 0x19f   :  { %v1129_v25 = vadd.f32 %v1128_v1, %v1108_v13  ;;  %v3637_v1 = vld [vmem:[#allocation6 + $0x164] sm:$0xf] }
 0x1a0   :  { %v3138_v3 = vor.u32 %v3637_v1, %v3135_v2  ;;  %v3653_v13 = vld [vmem:[#allocation6 + $0x1e4] sm:$0xf]  ;;  %v3167_v1 = vld [vmem:[#allocation6 + $0x1a8] sm:$0xf0] }
 0x1a1   :  { %v1131_v47 = vmul.f32 0.001953125, %v1129_v25  ;;  %v3202_v24 = vor.u32 %v3653_v13, %v3199_v28  ;;  %v3125_v25 = vld [vmem:[#allocation6 + $0x150] sm:$0xf]  ;;  %v3628_v28 = vld [vmem:[#allocation6 + $0x114] sm:$0xf0] }
 0x1a2   :  { %1733 = vmatpush.bf16.msrb.mxu2 %v3138_v3  ;;  %v3166_v3 = vor.u32 %v3646_v35, %v3165_v21  ;;  %v3093_v13 = vld [vmem:[#allocation6 + $0x110] sm:$0xf] }
 0x1a3   :  { %v1173_v6 = vmul.f32 %v1131_v47, %v1131_v47  ;;  %1752 = vmatpush.bf16.msrb.mxu3 %v3202_v24  ;;  %v3157_v24 = vld [vmem:[#allocation6 + $0x190] sm:$0xf] }
 0x1a6   :  { %v1169_v50 = vpop.f32.mrf.mxu3 }
 0x1a7   :  { %v1170_v5 = vadd.f32 %v1169_v50, %v1149_v36  ;;  %v3189_v50 = vld [vmem:[#allocation6 + $0x1d0] sm:$0xf] }
 0x1a9   :  { %v1172_v10 = vmul.f32 0.001953125, %v1170_v5  ;;  %v3652_v5 = vld [vmem:[#allocation6 + $0x1d4] sm:$0xf0] }
 0x1ab   :  { %v1174_v18 = vsub.f32 %v1172_v10, %v1173_v6  ;;  %v3635_v6 = vld [vmem:[#allocation6 + $0x154] sm:$0xf]  ;;  %v3190_v10 = vor.u32 %v3652_v5, %v3189_v50  ;;  %v3644_v50 = vld [vmem:[#allocation6 + $0x194] sm:$0xf0] }
 0x1ac   :  { %v3627_v5 = vld [vmem:[#allocation6 + $0x114] sm:$0xf] }
 0x1ad   :  { %v1176_v29 = vadd.f32 1e-05, %v1174_v18  ;;  %v3127_v18 = vld [vmem:[#allocation6 + $0x158] sm:$0xf0]  ;;  %1715 = vmatpush.bf16.msrb.mxu1 %v3190_v10 }
 0x1af   :  { %3696 = vrsqrt.f32 %v1176_v29  ;;  %vm1183_vm7 = vweird.f32 %v1176_v29 }
 0x1b5   :  { %v3697_v48 = vpop.eup %3696 }
 0x1b6   :  { %v1178_v59 = vmul.f32 %v3697_v48, %v1176_v29  ;;  %vm1184_vm6 = vweird.f32 %v3697_v48  ;;  %v3651_v29 = vld [vmem:[#allocation6 + $0x1d4] sm:$0xf] }
 0x1b7   :  { %vm1185_vm8 = vmor %vm1183_vm7, %vm1184_vm6 }
 0x1b8   :  { %v1179_v12 = vmul.f32 %v3697_v48, %v1178_v59  ;;  %vm1326_vm6 = vmand %vm1313_vm12, %vm1325_vm1  ;;  %v3191_v59 = vld [vmem:[#allocation6 + $0x1d8] sm:$0xf0]  ;;  %vm1338_vm12 = vsmask.f32 4368 }
 0x1b9   :  { %vm1327_vm7 = vmor %vm1326_vm6, %vm1324_vm4 }
 0x1ba   :  { %v1180_v33 = vmul.f32 0.5, %v1179_v12  ;;  %v1329_v31 = vsel %vm1327_vm7, 0, %v1328_v16  ;;  %v1332_v61 = vsel %vm1327_vm7, 0, %v1331_v53  ;;  %v3117_v12 = vld [vmem:[#allocation6 + $0x140] sm:$0xf] }
 0x1bb   :  { %1330 = vst [vmem:[#allocation2 + $0x10] sm:$0x11] %v1329_v31  ;;  %v3109_v53 = vld [vmem:[#allocation6 + $0x130] sm:$0xf]  ;;  %v3175_v31 = vld [vmem:[#allocation6 + $0x1b8] sm:$0xf0] }
 0x1bc   :  { %v1181_v34 = vsub.f32 1.5, %v1180_v33  ;;  %1333 = vst [vmem:[#allocation2 + $0x28] sm:$0x11] %v1332_v61  ;;  %v3194_v33 = vor.u32 %v3651_v29, %v3191_v59  ;;  %v3101_v61 = vld [vmem:[#allocation6 + $0x120] sm:$0xf]  ;;  %v3110_v22 = vor.u32 %v3632_v55, %v3109_v53  ;;  %v3178_v20 = vor.u32 %v3647_v58, %v3175_v31 }
 0x1bd   :  { %v3102_v2 = vor.u32 %v3630_v15, %v3101_v61  ;;  %v3643_v59 = vld [vmem:[#allocation6 + $0x194] sm:$0xf] }
 0x1be   :  { %v1182_v39 = vmul.f32 %v3697_v48, %v1181_v34  ;;  %v3634_v34 = vld [vmem:[#allocation6 + $0x144] sm:$0xf0]  ;;  %1753 = vmatpush.bf16.msrb.mxu3 %v3194_v33  ;;  %v3085_v33 = vld [vmem:[#allocation6 + $0x100] sm:$0xf] }
 0x1c0   :  { %v1186_v42 = vsel %vm1185_vm8, %v3697_v48, %v1182_v39  ;;  %v3130_v48 = vor.u32 %v3635_v6, %v3127_v18  ;;  %v3181_v39 = vld [vmem:[#allocation6 + $0x1c0] sm:$0xf]  ;;  %vm1380_vm8 = vcmask 1043456   ;;  %v3095_v6 = vld [vmem:[#allocation6 + $0x118] sm:$0xf0] }
 0x1c1   :  { %v1187_v43 = vmul.f32 %v1186_v42, %v1175_v40  ;;  %v3650_v40 = vld [vmem:[#allocation6 + $0x1c4] sm:$0xf0]  ;;  %vm4226_vm13 = vmand %vm1380_vm8, %vm1323_vm15 }
 0x1c2   :  { %1734 = vmatpush.bf16.msrb.mxu2 %v3130_v48  ;;  %1754 = vmatpush.bf16.msrb.mxu3 %v3186_v54  ;;  %v3170_v48 = vor.u32 %v3645_v0, %v3167_v1  ;;  %v3623_v1 = vld [vmem:[#allocation6 + $0xf4] sm:$0xf]  ;;  %vm4238_vm15 = vmor %vm1311_vm11, %vm1338_vm12 }
 0x1c3   :  { %3079 = vmatmul.msk.f32.vlgmr.msra.gmra.mxu0 %vm1195_vm9, %v1187_v43  ;;  %3080 = vmatmul.msk.f32.vlgmr.msra.gmra.mxu1 %vm1195_vm9, %v1187_v43  ;;  %v1189_v45 = vmul.f32 %v1187_v43, %v1131_v47  ;;  %v3636_v47 = vld [vmem:[#allocation6 + $0x154] sm:$0xf0]  ;;  %vm1384_vm0 = vmor %vm4232_vm14, %vm4226_vm13 }
 0x1c4   :  { %v3126_v36 = vor.u32 %v3636_v47, %v3125_v25 }
 0x1c5   :  { %v1190_v32 = vsub.f32 %v1188_v44, %v1189_v45  ;;  %v3118_v44 = vor.u32 %v3634_v34, %v3117_v12  ;;  %v3182_v45 = vor.u32 %v3650_v40, %v3181_v39  ;;  %v3159_v12 = vld [vmem:[#allocation6 + $0x198] sm:$0xf0] }
 0x1c6   :  { %1696 = vmatpush.bf16.msrb.mxu0 %v3126_v36  ;;  %v3106_v36 = vor.u32 %v3629_v38, %v3103_v49  ;;  %1755 = vmatpush.bf16.msrb.mxu3 %v3178_v20  ;;  %v3287_v38 = vld [vmem:[#allocation6 + $0x78] sm:$0xf0]  ;;  %v3154_v49 = vor.u32 %v3641_v26, %v3151_v37  ;;  %v3603_v26 = vld [vmem:[#allocation6 + $0x54] sm:$0xf] }
 0x1c7   :  { %3081 = vmatmul.msk.f32.vlgmr.msra.gmra.mxu2 %vm1195_vm9, %v1190_v32  ;;  %3082 = vmatmul.msk.f32.vlgmr.msra.gmra.mxu3 %vm1195_vm9, %v1190_v32  ;;  %v3633_v32 = vld [vmem:[#allocation6 + $0x144] sm:$0xf]  ;;  %v3271_v37 = vld [vmem:[#allocation6 + $0x58] sm:$0xf0] }
 0x1c8   :  { %v3122_v19 = vor.u32 %v3633_v32, %v3119_v14  ;;  %1716 = vmatpush.bf16.msrb.mxu1 %v3182_v45  ;;  %v3158_v45 = vor.u32 %v3644_v50, %v3157_v24  ;;  %v3098_v32 = vor.u32 %v3627_v5, %v3095_v6  ;;  %v3625_v14 = vld [vmem:[#allocation6 + $0x104] sm:$0xf]  ;;  %v3624_v50 = vld [vmem:[#allocation6 + $0xf4] sm:$0xf0]  ;;  %v3274_v35 = vor.u32 %v3603_v26, %v3271_v37 }
 0x1ca   :  { %1697 = vmatpush.bf16.msrb.mxu0 %v3118_v44  ;;  %1735 = vmatpush.bf16.msrb.mxu2 %v3122_v19 }
 0x1cb   :  { %1756 = vmatpush.bf16.msrb.mxu3 %v3170_v48  ;;  %v3621_v48 = vld [vmem:[#allocation6 + $0xe4] sm:$0xf] }
 0x1cc   :  { %1717 = vmatpush.bf16.msrb.mxu1 %v3174_v23 }
 0x1ce   :  { %1698 = vmatpush.bf16.msrb.mxu0 %v3110_v22  ;;  %1736 = vmatpush.bf16.msrb.mxu2 %v3114_v27  ;;  %v3607_v22 = vld [vmem:[#allocation6 + $0x74] sm:$0xf] }
 0x1cf   :  { %v3290_v0 = vor.u32 %v3607_v22, %v3287_v38 }
 0x1d0   :  { %1718 = vmatpush.bf16.msrb.mxu1 %v3166_v3  ;;  %v3285_v3 = vld [vmem:[#allocation6 + $0x70] sm:$0xf] }
 0x1d2   :  { %1699 = vmatpush.bf16.msrb.mxu0 %v3102_v2  ;;  %1737 = vmatpush.bf16.msrb.mxu2 %v3106_v36  ;;  %v3351_v2 = vld [vmem:[#allocation6 + $0xf8] sm:$0xf0]  ;;  %v3349_v36 = vld [vmem:[#allocation6 + $0xf0] sm:$0xf] }
 0x1d3   :  { %v3354_v5 = vor.u32 %v3623_v1, %v3351_v2  ;;  %v3620_v1 = vld [vmem:[#allocation6 + $0xd4] sm:$0xf0] }
 0x1d4   :  { %1719 = vmatpush.bf16.msrb.mxu1 %v3158_v45 }
 0x1d6   :  { %1738 = vmatpush.bf16.msrb.mxu2 %v3098_v32 }
 0x240   :  { %v1216_v42 = vpop.f32.mrf.mxu0  ;;  %v1236_v43 = vpop.f32.mrf.mxu1 }
 0x241   :  { %v1282_v51 = vperm.slane %v1216_v42, 0  ;;  %v1283_v16 = vperm.slane %v1236_v43, 0  ;;  %v3094_v42 = vor.u32 %v3628_v28, %v3093_v13  ;;  %v3149_v43 = vld [vmem:[#allocation6 + $0x180] sm:$0xf] }
 0x243   :  { %v1284_v25 = vmul.f32 %v1282_v51, %v4130_v62  ;;  %v1286_v47 = vmul.f32 %v1282_v51, %v4124_v57  ;;  %v1288_v10 = vmul.f32 %v1282_v51, %v4132_v17  ;;  %v1290_v18 = vmul.f32 %v1282_v51, %v4155_v7  ;;  %v3626_v17 = vld [vmem:[#allocation6 + $0x104] sm:$0xf0]  ;;  %1700 = vmatpush.bf16.msrb.mxu0 %v3094_v42 }
 0x244   :  { %v1285_v29 = vmul.f32 %v1283_v16, %v4157_v8  ;;  %v1287_v62 = vmul.f32 %v1283_v16, %v4151_v4  ;;  %v1289_v57 = vmul.f32 %v1283_v16, %v4159_v9  ;;  %v1291_v34 = vmul.f32 %v1283_v16, %v4174_v60  ;;  %v3642_v7 = vld [vmem:[#allocation6 + $0x184] sm:$0xf0] }
 0x245   :  { %v3162_v4 = vor.u32 %v3643_v59, %v3159_v12  ;;  %v3086_v9 = vor.u32 %v3626_v17, %v3085_v33  ;;  %v3150_v51 = vor.u32 %v3642_v7, %v3149_v43  ;;  %v3090_v60 = vor.u32 %v3625_v14, %v3087_v46  ;;  %v1385_v43 = vld [vmem:[#allocation2] sm:$0xff]  ;;  %v1389_v7 = vld [vmem:[#allocation2 + $0x10] sm:$0x11]  ;;  %v1392_v14 = vld [vmem:[#allocation2 + $0x18] sm:$0xff] }
 0x246   :  { %v1396_v46 = vld [vmem:[#allocation2 + $0x28] sm:$0x11] }
 0x247   :  { %1757 = vmatpush.bf16.msrb.mxu3 %v3162_v4  ;;  %1701 = vmatpush.bf16.msrb.mxu0 %v3086_v9 }
 0x248   :  { %1720 = vmatpush.bf16.msrb.mxu1 %v3150_v51  ;;  %1739 = vmatpush.bf16.msrb.mxu2 %v3090_v60  ;;  %v3606_v51 = vld [vmem:[#allocation6 + $0x64] sm:$0xf0] }
 0x24a   :  { %v1259_v39 = vpop.f32.mrf.mxu2  ;;  %v1279_v40 = vpop.f32.mrf.mxu3 }
 0x24b   :  { %v1292_v44 = vperm.slane %v1259_v39, 0  ;;  %v1293_v8 = vperm.slane %v1279_v40, 0  ;;  %1758 = vmatpush.bf16.msrb.mxu3 %v3154_v49  ;;  %v3604_v49 = vld [vmem:[#allocation6 + $0x54] sm:$0xf0] }
 0x24c   :  { %1988 = vmatpush.bf16.msra.mxu2 %v3290_v0  ;;  %v3333_v0 = vld [vmem:[#allocation6 + $0xd0] sm:$0xf] }
 0x24d   :  { %v1294_v16 = vadd.f32 %v1292_v44, %v1284_v25  ;;  %v1296_v19 = vadd.f32 %v1292_v44, %v1286_v47  ;;  %v1298_v30 = vadd.f32 %v1292_v44, %v1288_v10  ;;  %v1300_v53 = vadd.f32 %v1292_v44, %v1290_v18  ;;  %v3608_v47 = vld [vmem:[#allocation6 + $0x74] sm:$0xf0]  ;;  %v3605_v18 = vld [vmem:[#allocation6 + $0x64] sm:$0xf]  ;;  %v3277_v44 = vld [vmem:[#allocation6 + $0x60] sm:$0xf] }
 0x24e   :  { %v1295_v54 = vadd.f32 %v1293_v8, %v1285_v29  ;;  %v1297_v55 = vadd.f32 %v1293_v8, %v1287_v62  ;;  %v1299_v56 = vadd.f32 %v1293_v8, %v1289_v57  ;;  %v1301_v11 = vadd.f32 %v1293_v8, %v1291_v34  ;;  %v3279_v29 = vld [vmem:[#allocation6 + $0x68] sm:$0xf0] }
 0x24f   :  { %v1302_v58 = vmax.f32 %v1294_v16, 0.0  ;;  %v1304_v31 = vmax.f32 %v1296_v19, 0.0  ;;  %v1306_v61 = vmax.f32 %v1298_v30, 0.0  ;;  %v1308_v15 = vmax.f32 %v1300_v53, 0.0  ;;  %v3343_v34 = vld [vmem:[#allocation6 + $0xe8] sm:$0xf0]  ;;  %2007 = vmatpush.bf16.msra.mxu3 %v3354_v5 }
 0x250   :  { %v1303_v23 = vmax.f32 %v1295_v54, 0.0  ;;  %v1305_v27 = vmax.f32 %v1297_v55, 0.0  ;;  %v1307_v20 = vmax.f32 %v1299_v56, 0.0  ;;  %v1309_v21 = vmax.f32 %v1301_v11, 0.0  ;;  %v3341_v30 = vld [vmem:[#allocation6 + $0xe0] sm:$0xf] }
 0x251   :  { %v3286_v6 = vor.u32 %v3608_v47, %v3285_v3  ;;  %v3350_v10 = vor.u32 %v3624_v50, %v3349_v36  ;;  %v3282_v4 = vor.u32 %v3605_v18, %v3279_v29  ;;  %v3346_v9 = vor.u32 %v3621_v48, %v3343_v34  ;;  %v3622_v53 = vld [vmem:[#allocation6 + $0xe4] sm:$0xf0]  ;;  %v3327_v48 = vld [vmem:[#allocation6 + $0xc8] sm:$0xf0] }
 0x252   :  { %v1334_v13 = vpack.c.bf16 %v1303_v23, %v1302_v58  ;;  %v1335_v28 = vpack.c.bf16 %v1305_v27, %v1304_v31  ;;  %v1336_v24 = vpack.c.bf16 %v1307_v20, %v1306_v61  ;;  %v1337_v25 = vpack.c.bf16 %v1309_v21, %v1308_v15  ;;  %v3619_v58 = vld [vmem:[#allocation6 + $0xd4] sm:$0xf]  ;;  %v3335_v23 = vld [vmem:[#allocation6 + $0xd8] sm:$0xf0]  ;;  %v3269_v27 = vld [vmem:[#allocation6 + $0x50] sm:$0xf] }
 0x253   :  { %1950 = vmatpush.bf16.msra.mxu0 %v3286_v6  ;;  %1969 = vmatpush.bf16.msra.mxu1 %v3350_v10  ;;  %v3278_v19 = vor.u32 %v3606_v51, %v3277_v44  ;;  %v3342_v5 = vor.u32 %v3622_v53, %v3341_v30  ;;  %v3617_v6 = vld [vmem:[#allocation6 + $0xc4] sm:$0xf]  ;;  %v3338_v18 = vor.u32 %v3619_v58, %v3335_v23  ;;  %v3618_v44 = vld [vmem:[#allocation6 + $0xc4] sm:$0xf0]  ;;  %v3255_v51 = vld [vmem:[#allocation6 + $0x38] sm:$0xf0] }
 0x254   :  { %v1341_v59 = vshrl.u32 %v1334_v13, 16  ;;  %v1344_v12 = vshll.u32 %v1334_v13, 16  ;;  %v1349_v33 = vshrl.u32 %v1335_v28, 16  ;;  %v1352_v62 = vshll.u32 %v1335_v28, 16  ;;  %1989 = vmatpush.bf16.msra.mxu2 %v3282_v4  ;;  %2008 = vmatpush.bf16.msra.mxu3 %v3346_v9  ;;  %v3319_v30 = vld [vmem:[#allocation6 + $0xb8] sm:$0xf0] }
 0x255   :  { %v1358_v39 = vshrl.u32 %v1336_v24, 16  ;;  %v1361_v40 = vshll.u32 %v1336_v24, 16  ;;  %v1366_v42 = vshrl.u32 %v1337_v25, 16  ;;  %v1369_v17 = vshll.u32 %v1337_v25, 16  ;;  %v3601_v24 = vld [vmem:[#allocation6 + $0x44] sm:$0xf] }
 0x256   :  { %v1343_v45 = vrot.slane %v1341_v59, 7  ;;  %v1351_v32 = vrot.slane %v1349_v33, 7  ;;  %v3263_v25 = vld [vmem:[#allocation6 + $0x48] sm:$0xf0]  ;;  %v3270_v29 = vor.u32 %v3604_v49, %v3269_v27  ;;  %v3334_v33 = vor.u32 %v3620_v1, %v3333_v0  ;;  %v3317_v58 = vld [vmem:[#allocation6 + $0xb0] sm:$0xf] }
 0x257   :  { %v1360_v60 = vrot.slane %v1358_v39, 7  ;;  %v1368_v16 = vrot.slane %v1366_v42, 7  ;;  %1951 = vmatpush.bf16.msra.mxu0 %v3278_v19  ;;  %1970 = vmatpush.bf16.msra.mxu1 %v3342_v5  ;;  %v3266_v57 = vor.u32 %v3601_v24, %v3263_v25  ;;  %v3330_v34 = vor.u32 %v3617_v6, %v3327_v48  ;;  %v3602_v39 = vld [vmem:[#allocation6 + $0x44] sm:$0xf0]  ;;  %v3615_v19 = vld [vmem:[#allocation6 + $0xb4] sm:$0xf] }
 0x258   :  { %v1346_v54 = vor.u32 %v1344_v12, %v1343_v45  ;;  %v1347_v55 = vrot.slane %v1343_v45, 4  ;;  %v1354_v56 = vor.u32 %v1352_v62, %v1351_v32  ;;  %v1356_v11 = vrot.slane %v1351_v32, 4  ;;  %v3261_v62 = vld [vmem:[#allocation6 + $0x40] sm:$0xf]  ;;  %1990 = vmatpush.bf16.msra.mxu2 %v3274_v35  ;;  %2009 = vmatpush.bf16.msra.mxu3 %v3338_v18  ;;  %v3599_v32 = vld [vmem:[#allocation6 + $0x34] sm:$0xf] }
 0x259   :  { %v1363_v31 = vor.u32 %v1361_v40, %v1360_v60  ;;  %v1364_v61 = vrot.slane %v1360_v60, 4  ;;  %v1371_v15 = vor.u32 %v1369_v17, %v1368_v16  ;;  %v1373_v22 = vrot.slane %v1368_v16, 4  ;;  %v3325_v40 = vld [vmem:[#allocation6 + $0xc0] sm:$0xf]  ;;  %v3597_v27 = vld [vmem:[#allocation6 + $0x24] sm:$0xf] }
 0x25a   :  { %v4248_v20 = vsel %vm4238_vm15, %v1347_v55, %v1354_v56  ;;  %v1386_v21 = vsel %vm1384_vm0, %v1346_v54, %v1385_v43  ;;  %v1390_v38 = vsel %vm4204_vm3, %v1356_v11, %v1389_v7  ;;  %v3262_v7 = vor.u32 %v3602_v39, %v3261_v62  ;;  %v3253_v56 = vld [vmem:[#allocation6 + $0x30] sm:$0xf]  ;;  %v3600_v11 = vld [vmem:[#allocation6 + $0x34] sm:$0xf0]  ;;  %v3598_v6 = vld [vmem:[#allocation6 + $0x24] sm:$0xf0] }
 0x25b   :  { %v4259_v2 = vsel %vm4238_vm15, %v1364_v61, %v1371_v15  ;;  %1387 = vst [vmem:[#allocation2] sm:$0xff] %v1386_v21  ;;  %v1393_v3 = vsel %vm1384_vm0, %v1363_v31, %v1392_v14  ;;  %v1397_v13 = vsel %vm4204_vm3, %v1373_v22, %v1396_v46  ;;  %v1438_v28 = vshrl.u32 %v1386_v21, 16  ;;  %1952 = vmatpush.bf16.msra.mxu0 %v3270_v29  ;;  %v3616_v31 = vld [vmem:[#allocation6 + $0xb4] sm:$0xf0]  ;;  %v3614_v35 = vld [vmem:[#allocation6 + $0xa4] sm:$0xf0] }
 0x25c   :  { %1388 = vst [vmem:[#allocation2 + $0x8] sm:$0xff] %v4248_v20  ;;  %v1441_v47 = vshll.u32 %v1386_v21, 16  ;;  %v1447_v36 = vshll.u32 %v4248_v20, 16  ;;  %v1451_v50 = vshrl.u32 %v4248_v20, 16  ;;  %v1462_v42 = vshrl.u32 %v1393_v3, 16  ;;  %1971 = vmatpush.bf16.msra.mxu1 %v3334_v33  ;;  %1991 = vmatpush.bf16.msra.mxu2 %v3266_v57 }
 0x25d   :  { %1391 = vst [vmem:[#allocation2 + $0x10] sm:$0x11] %v1390_v38  ;;  %v1440_v10 = vrot.slane %v1438_v28, 4  ;;  %v3326_v8 = vor.u32 %v3618_v44, %v3325_v40  ;;  %v1465_v45 = vshll.u32 %v1393_v3, 16  ;;  %v1471_v4 = vshll.u32 %v4259_v2, 16  ;;  %2010 = vmatpush.bf16.msra.mxu3 %v3330_v34 }
 0x25e   :  { %1394 = vst [vmem:[#allocation2 + $0x18] sm:$0xff] %v1393_v3  ;;  %v1443_v52 = vrot.slane %v1441_v47, 5  ;;  %v1449_v59 = vrot.slane %v1447_v36, 5  ;;  %v1453_v12 = vrot.slane %v1451_v50, 4  ;;  %v4272_v46 = vrot.slane %v1462_v42, 4 }
 0x25f   :  { %1395 = vst [vmem:[#allocation2 + $0x20] sm:$0xff] %v4259_v2  ;;  %v1475_v9 = vshrl.u32 %v4259_v2, 16  ;;  %v3258_v16 = vor.u32 %v3599_v32, %v3255_v51  ;;  %v2034_v53 = vrot.slane %v4248_v20, 5  ;;  %1953 = vmatpush.bf16.msra.mxu0 %v3262_v7  ;;  %v3322_v55 = vor.u32 %v3615_v19, %v3319_v30  ;;  %v3247_v21 = vld [vmem:[#allocation6 + $0x28] sm:$0xf0] }
 0x260   :  { %1398 = vst [vmem:[#allocation2 + $0x28] sm:$0x11] %v1397_v13  ;;  %v1444_v17 = vor.u32 %v1443_v52, %v1440_v10  ;;  %v1454_v43 = vor.u32 %v1453_v12, %v1449_v59  ;;  %v4277_v37 = vrot.slane %v1465_v45, 5  ;;  %1972 = vmatpush.bf16.msra.mxu1 %v3326_v8  ;;  %v4281_v15 = vrot.slane %v1471_v4, 5  ;;  %v3613_v3 = vld [vmem:[#allocation6 + $0xa4] sm:$0xf] }
 0x261   :  { %v3254_v22 = vor.u32 %v3600_v11, %v3253_v56  ;;  %v3318_v23 = vor.u32 %v3616_v31, %v3317_v58  ;;  %v1477_v0 = vrot.slane %v1475_v9, 4  ;;  %1992 = vmatpush.bf16.msra.mxu2 %v3258_v16  ;;  %2011 = vmatpush.bf16.msra.mxu3 %v3322_v55  ;;  %v3250_v1 = vor.u32 %v3597_v27, %v3247_v21  ;;  %v3311_v13 = vld [vmem:[#allocation6 + $0xa8] sm:$0xf0]  ;;  %v3245_v28 = vld [vmem:[#allocation6 + $0x20] sm:$0xf] }
 0x262   :  { %v1445_v14 = vrot.slane %v1444_v17, 4  ;;  %v1455_v60 = vrot.slane %v1454_v43, 4  ;;  %v2036_v24 = vrot.slane %v2034_v53, 4  ;;  %v3314_v5 = vor.u32 %v3613_v3, %v3311_v13  ;;  %v3309_v10 = vld [vmem:[#allocation6 + $0xa0] sm:$0xf] }
 0x263   :  { %1954 = vmatpush.bf16.msra.mxu0 %v3254_v22  ;;  %v3246_v52 = vor.u32 %v3598_v6, %v3245_v28  ;;  %v3239_v12 = vld [vmem:[#allocation6 + $0x18] sm:$0xf0]  ;;  %v1468_v33 = vor.u32 %v4277_v37, %v4272_v46  ;;  %v1478_v62 = vor.u32 %v1477_v0, %v4281_v15  ;;  %v3611_v57 = vld [vmem:[#allocation6 + $0x94] sm:$0xf]  ;;  %v3237_v39 = vld [vmem:[#allocation6 + $0x10] sm:$0xf]  ;;  %v3310_v43 = vor.u32 %v3614_v35, %v3309_v10 }
 0x264   :  { %v1435_v54 = vld [vmem:[#allocation2 + $0x10] sm:$0x11]  ;;  %v1450_v61 = vsel %vm3864_vm2, %v1445_v14, %v1449_v59  ;;  %1973 = vmatpush.bf16.msra.mxu1 %v3318_v23  ;;  %v3595_v59 = vld [vmem:[#allocation6 + $0x14] sm:$0xf]  ;;  %v3303_v34 = vld [vmem:[#allocation6 + $0x98] sm:$0xf0] }
 0x265   :  { %v1457_v26 = vshll.u32 %v1435_v54, 16  ;;  %v2037_v25 = vrot.slane %v1435_v54, 5  ;;  %v1518_v36 = vunpack.c.l.b16 %v1450_v61  ;;  %v1519_v50 = vunpack.c.h.b16 %v1450_v61  ;;  %1993 = vmatpush.bf16.msra.mxu2 %v3250_v1  ;;  %2012 = vmatpush.bf16.msra.mxu3 %v3314_v5  ;;  %v3596_v44 = vld [vmem:[#allocation6 + $0x14] sm:$0xf0]  ;;  %v3301_v8 = vld [vmem:[#allocation6 + $0x90] sm:$0xf] }
 0x266   :  { %v3242_v7 = vor.u32 %v3595_v59, %v3239_v12  ;;  %v3612_v45 = vld [vmem:[#allocation6 + $0x94] sm:$0xf0]  ;;  %v3306_v32 = vor.u32 %v3611_v57, %v3303_v34  ;;  %v3238_v14 = vor.u32 %v3596_v44, %v3237_v39  ;;  %v3593_v46 = vld [vmem:[#allocation6 + $0x4] sm:$0xf]  ;;  %v3231_v4 = vld [vmem:[#allocation6 + $0x8] sm:$0xf0] }
 0x267   :  { %v1459_v38 = vrot.slane %v1457_v26, 5  ;;  %v4283_v49 = vld [vmem:[#allocation2 + $0x28] sm:$0x11]  ;;  %v4295_v40 = vsel %vm3915_vm5, %v2036_v24, %v2037_v25  ;;  %1955 = vmatpush.bf16.msra.mxu0 %v3246_v52  ;;  %v3609_v9 = vld [vmem:[#allocation6 + $0x84] sm:$0xf]  ;;  %v1469_v19 = vrot.slane %v1468_v33, 4  ;;  %v3302_v55 = vor.u32 %v3612_v45, %v3301_v8 }
 0x268   :  { %v1481_v48 = vshll.u32 %v4283_v49, 16  ;;  %v3295_v51 = vld [vmem:[#allocation6 + $0x88] sm:$0xf0]  ;;  %v3594_v16 = vld [vmem:[#allocation6 + $0x4] sm:$0xf0]  ;;  %v1479_v30 = vrot.slane %v1478_v62, 4  ;;  %1974 = vmatpush.bf16.msra.mxu1 %v3310_v43  ;;  %v3234_v56 = vor.u32 %v3593_v46, %v3231_v4 }
 0x269   :  { %v1460_v47 = vsel %vm3864_vm2, %v1455_v60, %v1459_v38  ;;  %v3229_v60 = vld [vmem:[#allocation6] sm:$0xf]  ;;  %1994 = vmatpush.bf16.msra.mxu2 %v3242_v7  ;;  %v3610_v26 = vld [vmem:[#allocation6 + $0x84] sm:$0xf0]  ;;  %2013 = vmatpush.bf16.msra.mxu3 %v3306_v32  ;;  %v3298_v37 = vor.u32 %v3609_v9, %v3295_v51  ;;  %v3671_v31 = vld [vmem:[#allocation6 + $0x274] sm:$0xf]  ;;  %v1474_v52 = vsel %vm3864_vm2, %v1469_v19, %v4281_v15 }
 0x26a   :  { %v1520_v18 = vunpack.c.l.b16 %v1460_v47  ;;  %v1521_v29 = vunpack.c.h.b16 %v1460_v47  ;;  %v1483_v54 = vrot.slane %v1481_v48, 5  ;;  %v3293_v11 = vld [vmem:[#allocation6 + $0x80] sm:$0xf]  ;;  %v3230_v58 = vor.u32 %v3594_v16, %v3229_v60  ;;  %v3417_v61 = vld [vmem:[#allocation6 + $0x278] sm:$0xf0] }
 0x26b   :  { %1956 = vmatpush.bf16.msra.mxu0 %v3238_v14  ;;  %v3687_v22 = vld [vmem:[#allocation6 + $0x2f4] sm:$0xf]  ;;  %v3420_v23 = vor.u32 %v3671_v31, %v3417_v61  ;;  %v3481_v27 = vld [vmem:[#allocation6 + $0x2f8] sm:$0xf0]  ;;  %v3415_v21 = vld [vmem:[#allocation6 + $0x270] sm:$0xf]  ;;  %v3294_v24 = vor.u32 %v3610_v26, %v3293_v11  ;;  %v1522_v43 = vunpack.c.l.b16 %v1474_v52  ;;  %v1523_v7 = vunpack.c.h.b16 %v1474_v52 }
 0x26c   :  { %v1526_v42 = vpack.c.b16 %v1520_v18, %v1518_v36  ;;  %v1527_v17 = vpack.c.b16 %v1521_v29, %v1519_v50  ;;  %v3672_v38 = vld [vmem:[#allocation6 + $0x274] sm:$0xf0]  ;;  %v3484_v0 = vor.u32 %v3687_v22, %v3481_v27  ;;  %v3479_v3 = vld [vmem:[#allocation6 + $0x2f0] sm:$0xf]  ;;  %v3669_v28 = vld [vmem:[#allocation6 + $0x264] sm:$0xf]  ;;  %1975 = vmatpush.bf16.msra.mxu1 %v3302_v55  ;;  %v1484_v50 = vsel %vm3864_vm2, %v1479_v30, %v1483_v54 }
 0x26d   :  { %v3416_v1 = vor.u32 %v3672_v38, %v3415_v21  ;;  %v3688_v13 = vld [vmem:[#allocation6 + $0x2f4] sm:$0xf0]  ;;  %1995 = vmatpush.bf16.msra.mxu2 %v3234_v56  ;;  %v3409_v25 = vld [vmem:[#allocation6 + $0x268] sm:$0xf0]  ;;  %v3685_v47 = vld [vmem:[#allocation6 + $0x2e4] sm:$0xf]  ;;  %2014 = vmatpush.bf16.msra.mxu3 %v3298_v37  ;;  %v1524_v12 = vunpack.c.l.b16 %v1484_v50  ;;  %v1525_v33 = vunpack.c.h.b16 %v1484_v50  ;;  %v2081_v26 = vunpack.c.l.b16 %v4295_v40 }
 0x26e   :  { %1702 = vmatmul.bf16.vlgmr.msrb.gmra.mxu0 %v1526_v42  ;;  %1721 = vmatmul.bf16.vlgmr.msrb.gmra.mxu1 %v1527_v17  ;;  %v3473_v36 = vld [vmem:[#allocation6 + $0x2e8] sm:$0xf0]  ;;  %v3480_v5 = vor.u32 %v3688_v13, %v3479_v3  ;;  %v3407_v6 = vld [vmem:[#allocation6 + $0x260] sm:$0xf]  ;;  %v3670_v10 = vld [vmem:[#allocation6 + $0x264] sm:$0xf0]  ;;  %v3412_v35 = vor.u32 %v3669_v28, %v3409_v25  ;;  %v2082_v37 = vunpack.c.h.b16 %v4295_v40 }
 0x26f   :  { %1740 = vmatmul.bf16.vlgmr.msrb.gmra.mxu2 %v1526_v42  ;;  %1759 = vmatmul.bf16.vlgmr.msrb.gmra.mxu3 %v1527_v17  ;;  %v3476_v18 = vor.u32 %v3685_v47, %v3473_v36  ;;  %v3471_v29 = vld [vmem:[#allocation6 + $0x2e0] sm:$0xf]  ;;  %v3686_v48 = vld [vmem:[#allocation6 + $0x2e4] sm:$0xf0]  ;;  %v3408_v59 = vor.u32 %v3670_v10, %v3407_v6  ;;  %v3667_v62 = vld [vmem:[#allocation6 + $0x254] sm:$0xf]  ;;  %v1528_v45 = vpack.c.b16 %v1524_v12, %v1522_v43 }
 0x270   :  { %1957 = vmatpush.bf16.msra.mxu0 %v3230_v58  ;;  %1976 = vmatpush.bf16.msra.mxu1 %v3294_v24  ;;  %v3401_v57 = vld [vmem:[#allocation6 + $0x258] sm:$0xf0]  ;;  %v3472_v34 = vor.u32 %v3686_v48, %v3471_v29  ;;  %v3683_v39 = vld [vmem:[#allocation6 + $0x2d4] sm:$0xf]  ;;  %v3399_v17 = vld [vmem:[#allocation6 + $0x250] sm:$0xf]  ;;  %v1529_v32 = vpack.c.b16 %v1525_v33, %v1523_v7 }
 0x271   :  { %2293 = vmatpush.bf16.msrb.mxu2 %v3420_v23  ;;  %2312 = vmatpush.bf16.msrb.mxu3 %v3484_v0  ;;  %v3465_v42 = vld [vmem:[#allocation6 + $0x2d8] sm:$0xf0]  ;;  %v3668_v44 = vld [vmem:[#allocation6 + $0x254] sm:$0xf0]  ;;  %v3463_v8 = vld [vmem:[#allocation6 + $0x2d0] sm:$0xf]  ;;  %v3404_v14 = vor.u32 %v3667_v62, %v3401_v57 }
 0x272   :  { %v3665_v15 = vld [vmem:[#allocation6 + $0x244] sm:$0xf]  ;;  %v3468_v46 = vor.u32 %v3683_v39, %v3465_v42  ;;  %v3393_v4 = vld [vmem:[#allocation6 + $0x248] sm:$0xf0]  ;;  %v3400_v60 = vor.u32 %v3668_v44, %v3399_v17  ;;  %v3464_v16 = vor.u32 %v3684_v41, %v3463_v8  ;;  %v3391_v19 = vld [vmem:[#allocation6 + $0x240] sm:$0xf] }
 0x273   :  { %v3681_v9 = vld [vmem:[#allocation6 + $0x2c4] sm:$0xf]  ;;  %v3457_v51 = vld [vmem:[#allocation6 + $0x2c8] sm:$0xf0]  ;;  %v3666_v30 = vld [vmem:[#allocation6 + $0x244] sm:$0xf0]  ;;  %v3396_v58 = vor.u32 %v3665_v15, %v3393_v4 }
 0x274   :  { %2255 = vmatpush.bf16.msrb.mxu0 %v3416_v1  ;;  %2274 = vmatpush.bf16.msrb.mxu1 %v3480_v5  ;;  %v2026_v54 = vld [vmem:[#allocation2] sm:$0xee]  ;;  %v3455_v55 = vld [vmem:[#allocation6 + $0x2c0] sm:$0xf]  ;;  %v3682_v56 = vld [vmem:[#allocation6 + $0x2c4] sm:$0xf0]  ;;  %v3460_v31 = vor.u32 %v3681_v9, %v3457_v51  ;;  %v3392_v21 = vor.u32 %v3666_v30, %v3391_v19 }
 0x275   :  { %2294 = vmatpush.bf16.msrb.mxu2 %v3412_v35  ;;  %2313 = vmatpush.bf16.msrb.mxu3 %v3476_v18  ;;  %v3355_v11 = vrot.slane %v2026_v54, 9  ;;  %v3663_v61 = vld [vmem:[#allocation6 + $0x234] sm:$0xf]  ;;  %v3385_v22 = vld [vmem:[#allocation6 + $0x238] sm:$0xf0]  ;;  %v3456_v38 = vor.u32 %v3682_v56, %v3455_v55  ;;  %v2041_v10 = vrot.slane %v4259_v2, 5 }
 0x276   :  { %v2027_v27 = vld [vmem:[#allocation2 + $0x18] sm:$0xee]  ;;  %v3679_v0 = vld [vmem:[#allocation6 + $0x2b4] sm:$0xf]  ;;  %v3449_v1 = vld [vmem:[#allocation6 + $0x2b8] sm:$0xf0] }
 0x277   :  { %v2035_v23 = vsel %vm3915_vm5, %v3355_v11, %v2034_v53  ;;  %v3383_v3 = vld [vmem:[#allocation6 + $0x230] sm:$0xf]  ;;  %v3664_v28 = vld [vmem:[#allocation6 + $0x234] sm:$0xf0]  ;;  %v3356_v20 = vrot.slane %v2027_v27, 9  ;;  %v3388_v53 = vor.u32 %v3663_v61, %v3385_v22  ;;  %v3452_v50 = vor.u32 %v3679_v0, %v3449_v1 }
 0x278   :  { %2256 = vmatpush.bf16.msrb.mxu0 %v3408_v59  ;;  %2275 = vmatpush.bf16.msrb.mxu1 %v3472_v34  ;;  %v2079_v40 = vunpack.c.l.b16 %v2035_v23  ;;  %v2080_v13 = vunpack.c.h.b16 %v2035_v23  ;;  %v3447_v24 = vld [vmem:[#allocation6 + $0x2b0] sm:$0xf]  ;;  %v3680_v25 = vld [vmem:[#allocation6 + $0x2b4] sm:$0xf0]  ;;  %v3661_v5 = vld [vmem:[#allocation6 + $0x224] sm:$0xf]  ;;  %v3384_v35 = vor.u32 %v3664_v28, %v3383_v3 }
 0x279   :  { %2295 = vmatpush.bf16.msrb.mxu2 %v3404_v14  ;;  %2314 = vmatpush.bf16.msrb.mxu3 %v3468_v46  ;;  %v3377_v6 = vld [vmem:[#allocation6 + $0x228] sm:$0xf0]  ;;  %v3448_v18 = vor.u32 %v3680_v25, %v3447_v24  ;;  %v3677_v29 = vld [vmem:[#allocation6 + $0x2a4] sm:$0xf]  ;;  %v3375_v52 = vld [vmem:[#allocation6 + $0x220] sm:$0xf]  ;;  %v2042_v42 = vsel %vm3915_vm5, %v3356_v20, %v2041_v10 }
 0x27a   :  { %v4308_v47 = vpack.c.b16 %v2081_v26, %v2079_v40  ;;  %v4310_v36 = vpack.c.b16 %v2082_v37, %v2080_v13  ;;  %v3441_v48 = vld [vmem:[#allocation6 + $0x2a8] sm:$0xf0]  ;;  %v3213_v59 = vld [vmem:[#allocation2] sm:$0xf]  ;;  %v3590_v12 = vld [vmem:[#allocation2 + $0x4] sm:$0xf0]  ;;  %v3380_v2 = vor.u32 %v3661_v5, %v3377_v6  ;;  %v2083_v51 = vunpack.c.l.b16 %v2042_v42 }
 0x27b   :  { %v3662_v33 = vld [vmem:[#allocation6 + $0x224] sm:$0xf0]  ;;  %v3439_v62 = vld [vmem:[#allocation6 + $0x2a0] sm:$0xf]  ;;  %v3589_v34 = vld [vmem:[#allocation2 + $0x4] sm:$0xf]  ;;  %v3444_v43 = vor.u32 %v3677_v29, %v3441_v48 }
 0x27c   :  { %2257 = vmatpush.bf16.msrb.mxu0 %v3400_v60  ;;  %2276 = vmatpush.bf16.msrb.mxu1 %v3464_v16  ;;  %v3678_v57 = vld [vmem:[#allocation6 + $0x2a4] sm:$0xf0]  ;;  %v3215_v39 = vld [vmem:[#allocation2 + $0x8] sm:$0xf0]  ;;  %v2044_v17 = vrot.slane %v4283_v49, 5  ;;  %v3376_v41 = vor.u32 %v3662_v33, %v3375_v52  ;;  %v2043_v14 = vrot.slane %v2041_v10, 4  ;;  %v2084_v60 = vunpack.c.h.b16 %v2042_v42 }
 0x27d   :  { %2296 = vmatpush.bf16.msrb.mxu2 %v3396_v58  ;;  %2315 = vmatpush.bf16.msrb.mxu3 %v3460_v31  ;;  %v3659_v7 = vld [vmem:[#allocation6 + $0x214] sm:$0xf]  ;;  %v3369_v44 = vld [vmem:[#allocation6 + $0x218] sm:$0xf0]  ;;  %v3440_v15 = vor.u32 %v3678_v57, %v3439_v62  ;;  %v3660_v46 = vld [vmem:[#allocation6 + $0x214] sm:$0xf0]  ;;  %v3214_v49 = vor.u32 %v3590_v12, %v3213_v59  ;;  %v3218_v16 = vor.u32 %v3589_v34, %v3215_v39 }
 0x27e   :  { %1707 = vmatmul.bf16.gmra.mxu0 %v1528_v45  ;;  %1726 = vmatmul.bf16.gmra.mxu1 %v1529_v32  ;;  %v3675_v8 = vld [vmem:[#allocation6 + $0x294] sm:$0xf]  ;;  %v3431_v4 = vld [vmem:[#allocation6 + $0x290] sm:$0xf]  ;;  %v3676_v9 = vld [vmem:[#allocation6 + $0x294] sm:$0xf0]  ;;  %v2045_v19 = vsel %vm3915_vm5, %v2043_v14, %v2044_v17  ;;  %v3372_v30 = vor.u32 %v3659_v7, %v3369_v44 }
 0x27f   :  { %1745 = vmatmul.bf16.gmra.mxu2 %v1528_v45  ;;  %1764 = vmatmul.bf16.gmra.mxu3 %v1529_v32  ;;  %v3433_v45 = vld [vmem:[#allocation6 + $0x298] sm:$0xf0]  ;;  %v3367_v32 = vld [vmem:[#allocation6 + $0x210] sm:$0xf]  ;;  %v3657_v55 = vld [vmem:[#allocation6 + $0x204] sm:$0xf]  ;;  %v2085_v11 = vunpack.c.l.b16 %v2045_v19  ;;  %v2086_v26 = vunpack.c.h.b16 %v2045_v19  ;;  %v3432_v58 = vor.u32 %v3676_v9, %v3431_v4 }
 0x280   :  { %2258 = vmatpush.bf16.msrb.mxu0 %v3392_v21  ;;  %2277 = vmatpush.bf16.msrb.mxu1 %v3456_v38  ;;  %v3436_v54 = vor.u32 %v3675_v8, %v3433_v45  ;;  %v3361_v56 = vld [vmem:[#allocation6 + $0x208] sm:$0xf0]  ;;  %v3368_v37 = vor.u32 %v3660_v46, %v3367_v32  ;;  %v3673_v31 = vld [vmem:[#allocation6 + $0x284] sm:$0xf]  ;;  %v3359_v22 = vld [vmem:[#allocation6 + $0x200] sm:$0xf] }
 0x281   :  { %2297 = vmatpush.bf16.msrb.mxu2 %v3388_v53  ;;  %2316 = vmatpush.bf16.msrb.mxu3 %v3452_v50  ;;  %v3425_v61 = vld [vmem:[#allocation6 + $0x288] sm:$0xf0]  ;;  %v3658_v23 = vld [vmem:[#allocation6 + $0x204] sm:$0xf0]  ;;  %v2089_v21 = vpack.c.b16 %v2085_v11, %v2083_v51  ;;  %v2090_v38 = vpack.c.b16 %v2086_v26, %v2084_v60  ;;  %v3364_v0 = vor.u32 %v3657_v55, %v3361_v56  ;;  %v3592_v28 = vld [vmem:[#allocation2 + $0x1c] sm:$0xf0] }
 0x282   :  { %v3674_v27 = vld [vmem:[#allocation6 + $0x284] sm:$0xf0]  ;;  %v3428_v1 = vor.u32 %v3673_v31, %v3425_v61  ;;  %v3360_v3 = vor.u32 %v3658_v23, %v3359_v22  ;;  %v3591_v24 = vld [vmem:[#allocation2 + $0x1c] sm:$0xf]  ;;  %v3223_v25 = vld [vmem:[#allocation2 + $0x20] sm:$0xf0] }
 0x283   :  { %v3424_v40 = vor.u32 %v3674_v27, %v3423_v63  ;;  %v3221_v13 = vld [vmem:[#allocation2 + $0x18] sm:$0xf]  ;;  %v3226_v53 = vor.u32 %v3591_v24, %v3223_v25  ;;  %v2397_v51 = vld [vmem:[%s4604_s8 + $0x70] sm:$0xff]  ;;  %v2395_v55 = vld [vmem:[%s4604_s8 + $0x60] sm:$0xff] }
 0x284   :  { %2259 = vmatpush.bf16.msrb.mxu0 %v3384_v35  ;;  %2278 = vmatpush.bf16.msrb.mxu1 %v3448_v18  ;;  %v3222_v20 = vor.u32 %v3592_v28, %v3221_v13  ;;  %v2398_v46 = vld [vmem:[%s4604_s8 + $0x78] sm:$0xff]  ;;  %v2413_v56 = vld [vmem:[%s4604_s8 + $0xf0] sm:$0xff]  ;;  %v2392_v27 = vld [vmem:[%s4604_s8 + $0x48] sm:$0xff] }
 0x285   :  { %2298 = vmatpush.bf16.msrb.mxu2 %v3380_v2  ;;  %2317 = vmatpush.bf16.msrb.mxu3 %v3444_v43  ;;  %v2414_v19 = vld [vmem:[%s4604_s8 + $0xf8] sm:$0xff]  ;;  %v2393_v26 = vld [vmem:[%s4604_s8 + $0x50] sm:$0xff] }
 0x286   :  { %v2394_v11 = vld [vmem:[%s4604_s8 + $0x58] sm:$0xff]  ;;  %v2409_v13 = vld [vmem:[%s4604_s8 + $0xd0] sm:$0xff] }
 0x287   :  { %v2389_v25 = vld [vmem:[%s4604_s8 + $0x30] sm:$0xff] }
 0x288   :  { %2260 = vmatpush.bf16.msrb.mxu0 %v3376_v41  ;;  %2279 = vmatpush.bf16.msrb.mxu1 %v3440_v15 }
 0x289   :  { %2299 = vmatpush.bf16.msrb.mxu2 %v3372_v30  ;;  %2318 = vmatpush.bf16.msrb.mxu3 %v3436_v54 }
 0x28c   :  { %2261 = vmatpush.bf16.msrb.mxu0 %v3368_v37  ;;  %2280 = vmatpush.bf16.msrb.mxu1 %v3432_v58  ;;  %v2412_v37 = vld [vmem:[%s4604_s8 + $0xe8] sm:$0xff] }
 0x28d   :  { %2300 = vmatpush.bf16.msrb.mxu2 %v3364_v0  ;;  %2319 = vmatpush.bf16.msrb.mxu3 %v3428_v1 }
 0x28e   :  { %1958 = vmatmul.bf16.vlgmr.msra.gmra.mxu0 %v3214_v49  ;;  %1977 = vmatmul.bf16.vlgmr.msra.gmra.mxu1 %v3218_v16 }
 0x28f   :  { %1996 = vmatmul.bf16.vlgmr.msra.gmra.mxu2 %v3214_v49  ;;  %2015 = vmatmul.bf16.vlgmr.msra.gmra.mxu3 %v3218_v16  ;;  %v2396_v16 = vld [vmem:[%s4604_s8 + $0x68] sm:$0xff] }
 0x290   :  { %2262 = vmatpush.bf16.msrb.mxu0 %v3360_v3  ;;  %2281 = vmatpush.bf16.msrb.mxu1 %v3424_v40  ;;  %v2410_v3 = vld [vmem:[%s4604_s8 + $0xd8] sm:$0xff] }
 0x291   :  { %2456 = vmatpush.msra.mxu2 %v2398_v46  ;;  %2476 = vmatpush.msra.mxu3 %v2414_v19  ;;  %v2390_v40 = vld [vmem:[%s4604_s8 + $0x38] sm:$0xff] }
 0x293   :  { %2457 = vmatpush.msra.mxu2 %v2397_v51  ;;  %2477 = vmatpush.msra.mxu3 %v2413_v56 }
 0x294   :  { %2415 = vmatpush.msra.mxu0 %v2398_v46  ;;  %2435 = vmatpush.msra.mxu1 %v2414_v19 }
 0x295   :  { %2458 = vmatpush.msra.mxu2 %v2396_v16  ;;  %2478 = vmatpush.msra.mxu3 %v2412_v37 }
 0x296   :  { %2416 = vmatpush.msra.mxu0 %v2397_v51  ;;  %2436 = vmatpush.msra.mxu1 %v2413_v56 }
 0x297   :  { %2459 = vmatpush.msra.mxu2 %v2395_v55 }
 0x298   :  { %2417 = vmatpush.msra.mxu0 %v2396_v16  ;;  %2437 = vmatpush.msra.mxu1 %v2412_v37  ;;  %v2384_v16 = vld [vmem:[%s4604_s8 + $0x8] sm:$0xff] }
 0x299   :  { %2460 = vmatpush.msra.mxu2 %v2394_v11 }
 0x29a   :  { %2418 = vmatpush.msra.mxu0 %v2395_v55 }
 0x29b   :  { %2461 = vmatpush.msra.mxu2 %v2393_v26 }
 0x29c   :  { %2419 = vmatpush.msra.mxu0 %v2394_v11 }
 0x29d   :  { %2462 = vmatpush.msra.mxu2 %v2392_v27 }
 0x29e   :  { %1963 = vmatmul.bf16.gmra.mxu0 %v3222_v20  ;;  %1982 = vmatmul.bf16.gmra.mxu1 %v3226_v53 }
 0x29f   :  { %2001 = vmatmul.bf16.gmra.mxu2 %v3222_v20  ;;  %2020 = vmatmul.bf16.gmra.mxu3 %v3226_v53  ;;  %v2408_v20 = vld [vmem:[%s4604_s8 + $0xc8] sm:$0xff] }
 0x2a0   :  { %2420 = vmatpush.msra.mxu0 %v2393_v26  ;;  %v2388_v53 = vld [vmem:[%s4604_s8 + $0x28] sm:$0xff] }
 0x2a2   :  { %2421 = vmatpush.msra.mxu0 %v2392_v27 }
 0x2ae   :  { %2263 = vmatmul.bf16.vlgmr.msrb.gmra.mxu0 %v4308_v47  ;;  %2282 = vmatmul.bf16.vlgmr.msrb.gmra.mxu1 %v4310_v36 }
 0x2af   :  { %2301 = vmatmul.bf16.vlgmr.msrb.gmra.mxu2 %v4308_v47  ;;  %2320 = vmatmul.bf16.vlgmr.msrb.gmra.mxu3 %v4310_v36 }
 0x2be   :  { %2268 = vmatmul.bf16.gmra.mxu0 %v2089_v21  ;;  %2287 = vmatmul.bf16.gmra.mxu1 %v2090_v38 }
 0x2bf   :  { %2306 = vmatmul.bf16.gmra.mxu2 %v2089_v21  ;;  %2325 = vmatmul.bf16.gmra.mxu3 %v2090_v38  ;;  %v2411_v21 = vld [vmem:[%s4604_s8 + $0xe0] sm:$0xff] }
 0x2c0   :  { %v2391_v38 = vld [vmem:[%s4604_s8 + $0x40] sm:$0xff]  ;;  %2438 = vmatpush.msra.mxu1 %v2411_v21  ;;  %2479 = vmatpush.msra.mxu3 %v2411_v21  ;;  %v2401_v21 = vld [vmem:[%s4604_s8 + $0x90] sm:$0xff] }
 0x2c1   :  { %2422 = vmatpush.msra.mxu0 %v2391_v38  ;;  %2463 = vmatpush.msra.mxu2 %v2391_v38 }
 0x2c2   :  { %2439 = vmatpush.msra.mxu1 %v2410_v3  ;;  %2480 = vmatpush.msra.mxu3 %v2410_v3 }
 0x2c3   :  { %2423 = vmatpush.msra.mxu0 %v2390_v40  ;;  %2464 = vmatpush.msra.mxu2 %v2390_v40 }
 0x2c4   :  { %2440 = vmatpush.msra.mxu1 %v2409_v13  ;;  %2481 = vmatpush.msra.mxu3 %v2409_v13 }
 0x2c5   :  { %2424 = vmatpush.msra.mxu0 %v2389_v25  ;;  %2465 = vmatpush.msra.mxu2 %v2389_v25  ;;  %v2399_v25 = vld [vmem:[%s4604_s8 + $0x80] sm:$0xff] }
 0x2c6   :  { %2441 = vmatpush.msra.mxu1 %v2408_v20  ;;  %2482 = vmatpush.msra.mxu3 %v2408_v20 }
 0x2c7   :  { %2425 = vmatpush.msra.mxu0 %v2388_v53  ;;  %2466 = vmatpush.msra.mxu2 %v2388_v53 }
 0x2eb   :  { %v1703_v50 = vpop.f32.mrf.mxu0  ;;  %v1722_v5 = vpop.f32.mrf.mxu1 }
 0x2ec   :  { %v4322_v6 = vadd.f32 %v1722_v5, %v1703_v50 }
 0x2f2   :  { %v1741_v10 = vpop.f32.mrf.mxu2  ;;  %v1760_v35 = vpop.f32.mrf.mxu3 }
 0x2f3   :  { %v4324_v18 = vadd.f32 %v1760_v35, %v1741_v10  ;;  %v1705_v29 = vpop.f32.mrf.mxu0  ;;  %v1724_v48 = vpop.f32.mrf.mxu1 }
 0x2f4   :  { %v4326_v52 = vadd.f32 %v1724_v48, %v1705_v29 }
 0x2fa   :  { %v1743_v59 = vpop.f32.mrf.mxu2  ;;  %v1762_v47 = vpop.f32.mrf.mxu3 }
 0x2fb   :  { %v4328_v12 = vadd.f32 %v1762_v47, %v1743_v59  ;;  %v1708_v36 = vpop.f32.mrf.mxu0  ;;  %v1727_v33 = vpop.f32.mrf.mxu1  ;;  %v2387_v59 = vld [vmem:[%s4604_s8 + $0x20] sm:$0xff]  ;;  %v2406_v47 = vld [vmem:[%s4604_s8 + $0xb8] sm:$0xff] }
 0x2fc   :  { %v4330_v62 = vadd.f32 %v1727_v33, %v1708_v36  ;;  %2426 = vmatpush.msra.mxu0 %v2387_v59  ;;  %2467 = vmatpush.msra.mxu2 %v2387_v59 }
 0x302   :  { %v1746_v57 = vpop.f32.mrf.mxu2  ;;  %v1765_v34 = vpop.f32.mrf.mxu3 }
 0x303   :  { %v4332_v39 = vadd.f32 %v1765_v34, %v1746_v57  ;;  %v4334_v42 = vpop.f32.mrf.mxu0  ;;  %v4336_v17 = vpop.f32.mrf.mxu1 }
 0x304   :  { %v1730_v36 = vadd.f32 %v4336_v17, %v4334_v42  ;;  %v2405_v42 = vld [vmem:[%s4604_s8 + $0xb0] sm:$0xff] }
 0x30a   :  { %v4338_v2 = vpop.f32.mrf.mxu2  ;;  %v4340_v43 = vpop.f32.mrf.mxu3 }
 0x30b   :  { %v4342_v7 = vpop.f32.mrf.mxu0  ;;  %v4344_v44 = vpop.f32.mrf.mxu1 }
 0x30c   :  { %v1960_v24 = vadd.f32 %v4342_v7, %v4322_v6  ;;  %v2407_v6 = vld [vmem:[%s4604_s8 + $0xc0] sm:$0xff] }
 0x30d   :  { %2442 = vmatpush.msra.mxu1 %v2407_v6  ;;  %2483 = vmatpush.msra.mxu3 %v2407_v6 }
 0x30e   :  { %v1979_v57 = vadd.f32 %v4344_v44, %v1960_v24 }
 0x30f   :  { %2443 = vmatpush.msra.mxu1 %v2406_v47  ;;  %2484 = vmatpush.msra.mxu3 %v2406_v47 }
 0x311   :  { %2444 = vmatpush.msra.mxu1 %v2405_v42  ;;  %2485 = vmatpush.msra.mxu3 %v2405_v42 }
 0x312   :  { %v4346_v8 = vpop.f32.mrf.mxu2  ;;  %v4348_v41 = vpop.f32.mrf.mxu3 }
 0x313   :  { %v1961_v15 = vpop.f32.mrf.mxu0  ;;  %v4350_v45 = vpop.f32.mrf.mxu1  ;;  %v1998_v34 = vadd.f32 %v4346_v8, %v4324_v18  ;;  %v2404_v8 = vld [vmem:[%s4604_s8 + $0xa8] sm:$0xff] }
 0x314   :  { %v1962_v28 = vadd.f32 %v1961_v15, %v4326_v52  ;;  %v2386_v15 = vld [vmem:[%s4604_s8 + $0x18] sm:$0xff]  ;;  %2445 = vmatpush.msra.mxu1 %v2404_v8  ;;  %2486 = vmatpush.msra.mxu3 %v2404_v8 }
 0x315   :  { %2427 = vmatpush.msra.mxu0 %v2386_v15  ;;  %2468 = vmatpush.msra.mxu2 %v2386_v15 }
 0x316   :  { %v1981_v33 = vadd.f32 %v4350_v45, %v1962_v28 }
 0x31a   :  { %v4352_v32 = vpop.f32.mrf.mxu2  ;;  %v4354_v14 = vpop.f32.mrf.mxu3 }
 0x31b   :  { %v4359_v4 = vpop.f32.mrf.mxu0  ;;  %v4361_v9 = vpop.f32.mrf.mxu1  ;;  %v2000_v7 = vadd.f32 %v4352_v32, %v4328_v12  ;;  %v2385_v12 = vld [vmem:[%s4604_s8 + $0x10] sm:$0xff]  ;;  %v1768_v32 = vadd.f32 %v4340_v43, %v4338_v2  ;;  %v2403_v2 = vld [vmem:[%s4604_s8 + $0xa0] sm:$0xff] }
 0x31c   :  { %v1965_v50 = vadd.f32 %v4359_v4, %v4330_v62  ;;  %v2017_v4 = vadd.f32 %v4348_v41, %v1998_v34  ;;  %2428 = vmatpush.msra.mxu0 %v2385_v12  ;;  %2469 = vmatpush.msra.mxu2 %v2385_v12 }
 0x31d   :  { %v2019_v43 = vadd.f32 %v4354_v14, %v2000_v7  ;;  %v2383_v14 = vld [vmem:[%s4604_s8] sm:$0xff]  ;;  %2446 = vmatpush.msra.mxu1 %v2403_v2  ;;  %2487 = vmatpush.msra.mxu3 %v2403_v2 }
 0x31e   :  { %v1984_v17 = vadd.f32 %v4361_v9, %v1965_v50  ;;  %2429 = vmatpush.msra.mxu0 %v2384_v16  ;;  %2470 = vmatpush.msra.mxu2 %v2384_v16 }
 0x320   :  { %2430 = vmatpush.msra.mxu0 %v2383_v14  ;;  %2471 = vmatpush.msra.mxu2 %v2383_v14 }
 0x322   :  { %v4366_v60 = vpop.f32.mrf.mxu2  ;;  %v4368_v49 = vpop.f32.mrf.mxu3 }
 0x323   :  { %v4376_v30 = vpop.f32.mrf.mxu0  ;;  %v4378_v54 = vpop.f32.mrf.mxu1  ;;  %v2003_v9 = vadd.f32 %v4366_v60, %v4332_v39 }
 0x324   :  { %v1967_v44 = vadd.f32 %v4376_v30, %v1730_v36 }
 0x326   :  { %v1986_v19 = vadd.f32 %v4378_v54, %v1967_v44  ;;  %v2402_v54 = vld [vmem:[%s4604_s8 + $0x98] sm:$0xff] }
 0x327   :  { %2447 = vmatpush.msra.mxu1 %v2402_v54  ;;  %2488 = vmatpush.msra.mxu3 %v2402_v54  ;;  %v2517_v54 = vld [vmem:[%s4605_s9 + $0x10] sm:$0xff] }
 0x328   :  { %2579 = vmatpush.msrb.mxu2 %v2517_v54  ;;  %2536 = vmatpush.msrb.mxu0 %v2517_v54 }
 0x329   :  { %2448 = vmatpush.msra.mxu1 %v2401_v21  ;;  %2489 = vmatpush.msra.mxu3 %v2401_v21 }
 0x32a   :  { %v4395_v58 = vpop.f32.mrf.mxu2  ;;  %v4397_v31 = vpop.f32.mrf.mxu3 }
 0x32b   :  { %v2264_v61 = vpop.f32.mrf.mxu0  ;;  %v2283_v22 = vpop.f32.mrf.mxu1 }
 0x32c   :  { %v2284_v29 = vadd.f32 %v2283_v22, %v2264_v61 }
 0x32e   :  { %v4462_v18 = vadd.f32 %v2284_v29, %v1979_v57 }
 0x330   :  { %v2357_v60 = vmul.f32 %v4462_v18, %v4462_v18 }
 0x332   :  { %v4399_v23 = vpop.f32.mrf.mxu2  ;;  %v4401_v63 = vpop.f32.mrf.mxu3 }
 0x333   :  { %v2266_v0 = vpop.f32.mrf.mxu0  ;;  %v2285_v1 = vpop.f32.mrf.mxu1  ;;  %v2322_v55 = vadd.f32 %v4401_v63, %v4399_v23  ;;  %v2022_v23 = vadd.f32 %v4368_v49, %v2003_v9  ;;  %v2005_v63 = vadd.f32 %v4395_v58, %v1768_v32  ;;  %v2400_v58 = vld [vmem:[%s4604_s8 + $0x88] sm:$0xff]  ;;  %s2661_s8 = sshll.u32 %s3782_s28, 4  ;;  %s2662_s8 = int_to_ptr.vmem [resolvable:$true] %s2661_s8 }
 0x334   :  { %v2286_v5 = vadd.f32 %v2285_v1, %v2266_v0  ;;  %2449 = vmatpush.msra.mxu1 %v2400_v58  ;;  %2490 = vmatpush.msra.mxu3 %v2400_v58 }
 0x335   :  { %v4511_v3 = vadd.f32 %v2322_v55, %v2017_v4  ;;  %v2024_v20 = vadd.f32 %v4397_v31, %v2005_v63 }
 0x336   :  { %v4460_v45 = vadd.f32 %v2286_v5, %v1981_v33  ;;  %2450 = vmatpush.msra.mxu1 %v2399_v25  ;;  %2491 = vmatpush.msra.mxu3 %v2399_v25 }
 0x338   :  { %v2359_v41 = vmul.f32 %v4460_v45, %v4460_v45  ;;  %v2339_v37 = vadd.f32 %v4460_v45, %v4462_v18 }
 0x33a   :  { %v2304_v10 = vpop.f32.mrf.mxu2  ;;  %v2323_v35 = vpop.f32.mrf.mxu3  ;;  %v2365_v38 = vadd.f32 %v2359_v41, %v2357_v60 }
 0x33b   :  { %v2269_v48 = vpop.f32.mrf.mxu0  ;;  %v2288_v52 = vpop.f32.mrf.mxu1  ;;  %v2324_v51 = vadd.f32 %v2323_v35, %v2304_v10  ;;  %v2358_v35 = vmul.f32 %v4511_v3, %v4511_v3 }
 0x33c   :  { %v2289_v62 = vadd.f32 %v2288_v52, %v2269_v48 }
 0x33d   :  { %v4503_v27 = vadd.f32 %v2324_v51, %v2019_v43 }
 0x33e   :  { %v4472_v46 = vadd.f32 %v2289_v62, %v1984_v17 }
 0x33f   :  { %v2360_v24 = vmul.f32 %v4503_v27, %v4503_v27  ;;  %v2348_v6 = vadd.f32 %v4503_v27, %v4511_v3 }
 0x340   :  { %v2361_v61 = vmul.f32 %v4472_v46, %v4472_v46  ;;  %v2340_v0 = vadd.f32 %v2339_v37, %v4472_v46  ;;  %v2518_v37 = vld [vmem:[%s4605_s9 + $0x18] sm:$0xff] }
 0x341   :  { %v2374_v31 = vadd.f32 %v2360_v24, %v2358_v35  ;;  %2599 = vmatpush.msrb.mxu3 %v2518_v37  ;;  %2556 = vmatpush.msrb.mxu1 %v2518_v37 }
 0x342   :  { %v2307_v30 = vpop.f32.mrf.mxu2  ;;  %v2326_v39 = vpop.f32.mrf.mxu3  ;;  %v2366_v40 = vadd.f32 %v2365_v38, %v2361_v61  ;;  %v2515_v61 = vld [vmem:[%s4605_s9] sm:$0xff] }
 0x343   :  { %v2327_v56 = vadd.f32 %v2326_v39, %v2307_v30  ;;  %v2271_v11 = vpop.f32.mrf.mxu0  ;;  %v2290_v26 = vpop.f32.mrf.mxu1  ;;  %2580 = vmatpush.msrb.mxu2 %v2515_v61  ;;  %2537 = vmatpush.msrb.mxu0 %v2515_v61 }
 0x344   :  { %v2291_v22 = vadd.f32 %v2290_v26, %v2271_v11 }
 0x345   :  { %v4513_v49 = vadd.f32 %v2327_v56, %v2022_v23 }
 0x346   :  { %v4509_v1 = vadd.f32 %v2291_v22, %v1986_v19  ;;  %v2516_v22 = vld [vmem:[%s4605_s9 + $0x8] sm:$0xff] }
 0x347   :  { %v2362_v29 = vmul.f32 %v4513_v49, %v4513_v49  ;;  %v2349_v47 = vadd.f32 %v2348_v6, %v4513_v49  ;;  %2600 = vmatpush.msrb.mxu3 %v2516_v22  ;;  %2557 = vmatpush.msrb.mxu1 %v2516_v22  ;;  %v2512_v6 = vld [vmem:[%s4603_s7] sm:$0x1] }
 0x348   :  { %v2341_v13 = vadd.f32 %v2340_v0, %v4509_v1  ;;  %v2363_v28 = vmul.f32 %v4509_v1, %v4509_v1 }
 0x349   :  { %v2375_v57 = vadd.f32 %v2374_v31, %v2362_v29 }
 0x34a   :  { %v2342_v53 = vrot.slane %v2341_v13, 4  ;;  %v2367_v50 = vadd.f32 %v2366_v40, %v2363_v28  ;;  %v2309_v5 = vpop.f32.mrf.mxu2  ;;  %v2328_v10 = vpop.f32.mrf.mxu3 }
 0x34b   :  { %v2329_v48 = vadd.f32 %v2328_v10, %v2309_v5 }
 0x34c   :  { %v2343_v52 = vadd.f32 %v2342_v53, %v2341_v13  ;;  %v2368_v59 = vrot.slane %v2367_v50, 4 }
 0x34d   :  { %v4534_v36 = vadd.f32 %v2329_v48, %v2024_v20 }
 0x34e   :  { %v2344_v33 = vrot.slane %v2343_v52, 2  ;;  %v2369_v62 = vadd.f32 %v2368_v59, %v2367_v50  ;;  %v2499_v50 = vld [vmem:[%s4602_s6] sm:$0x1] }
 0x34f   :  { %v2350_v34 = vadd.f32 %v2349_v47, %v4534_v36  ;;  %v2364_v7 = vmul.f32 %v4534_v36, %v4534_v36 }
 0x350   :  { %v2345_v15 = vadd.f32 %v2344_v33, %v2343_v52  ;;  %v2370_v42 = vrot.slane %v2369_v62, 2 }
 0x351   :  { %v2351_v17 = vrot.slane %v2350_v34, 4  ;;  %v2376_v44 = vadd.f32 %v2375_v57, %v2364_v7 }
 0x352   :  { %v2346_v12 = vrot.slane %v2345_v15, 1  ;;  %v2371_v8 = vadd.f32 %v2370_v42, %v2369_v62 }
 0x353   :  { %v2352_v32 = vadd.f32 %v2351_v17, %v2350_v34  ;;  %v2377_v4 = vrot.slane %v2376_v44, 4  ;;  %v2625_v17 = vld [vmem:[%s4597_s1] sm:$0xff] }
 0x354   :  { %v2347_v9 = vadd.f32 %v2346_v12, %v2345_v15  ;;  %v2372_v51 = vrot.slane %v2371_v8, 1 }
 0x355   :  { %v2353_v16 = vrot.slane %v2352_v32, 2  ;;  %v2378_v2 = vadd.f32 %v2377_v4, %v2376_v44 }
 0x356   :  { %2431 = vmatmul.f32.vlgmr.msra.gmra.mxu0 %v2347_v9  ;;  %v2373_v43 = vadd.f32 %v2372_v51, %v2371_v8 }
 0x357   :  { %v2354_v19 = vadd.f32 %v2353_v16, %v2352_v32  ;;  %v2379_v41 = vrot.slane %v2378_v2, 2  ;;  %v2631_v32 = vld [vmem:[%s4597_s1 + $0x30] sm:$0xff] }
 0x358   :  { %2472 = vmatmul.f32.vlgmr.msra.gmra.mxu2 %v2373_v43 }
 0x359   :  { %v2355_v30 = vrot.slane %v2354_v19, 1  ;;  %v2380_v39 = vadd.f32 %v2379_v41, %v2378_v2 }
 0x35b   :  { %v2356_v60 = vadd.f32 %v2355_v30, %v2354_v19  ;;  %v2381_v55 = vrot.slane %v2380_v39, 1  ;;  %v2630_v19 = vld [vmem:[%s4597_s1 + $0x28] sm:$0xff] }
 0x35d   :  { %2451 = vmatmul.f32.vlgmr.msra.gmra.mxu1 %v2356_v60  ;;  %v2382_v56 = vadd.f32 %v2381_v55, %v2380_v39  ;;  %v2632_v55 = vld [vmem:[%s4597_s1 + $0x38] sm:$0xff] }
 0x35f   :  { %2492 = vmatmul.f32.vlgmr.msra.gmra.mxu3 %v2382_v56 }
 0x3d3   :  { %v2432_v26 = vpop.f32.mrf.mxu0 }
 0x3da   :  { %v2452_v11 = vpop.f32.mrf.mxu1 }
 0x3db   :  { %v2453_v14 = vadd.f32 %v2452_v11, %v2432_v26  ;;  %v2473_v63 = vpop.f32.mrf.mxu2 }
 0x3dd   :  { %v2455_v23 = vmul.f32 0.001953125, %v2453_v14 }
 0x3df   :  { %v2497_v0 = vmul.f32 %v2455_v23, %v2455_v23 }
 0x3e2   :  { %v2493_v21 = vpop.f32.mrf.mxu3 }
 0x3e3   :  { %v2494_v38 = vadd.f32 %v2493_v21, %v2473_v63 }
 0x3e5   :  { %v2496_v58 = vmul.f32 0.001953125, %v2494_v38 }
 0x3e7   :  { %v2498_v40 = vsub.f32 %v2496_v58, %v2497_v0 }
 0x3e9   :  { %v2500_v13 = vadd.f32 1e-05, %v2498_v40 }
 0x3eb   :  { %3698 = vrsqrt.f32 %v2500_v13  ;;  %vm2507_vm5 = vweird.f32 %v2500_v13 }
 0x3f1   :  { %v3699_v28 = vpop.eup %3698 }
 0x3f2   :  { %v2502_v24 = vmul.f32 %v3699_v28, %v2500_v13  ;;  %vm2508_vm2 = vweird.f32 %v3699_v28 }
 0x3f3   :  { %vm2509_vm11 = vmor %vm2507_vm5, %vm2508_vm2 }
 0x3f4   :  { %v2503_v25 = vmul.f32 %v3699_v28, %v2502_v24 }
 0x3f6   :  { %v2504_v20 = vmul.f32 0.5, %v2503_v25 }
 0x3f8   :  { %v2505_v53 = vsub.f32 1.5, %v2504_v20 }
 0x3fa   :  { %v2506_v5 = vmul.f32 %v3699_v28, %v2505_v53 }
 0x3fc   :  { %v2510_v10 = vsel %vm2509_vm11, %v3699_v28, %v2506_v5 }
 0x3fd   :  { %v2511_v35 = vmul.f32 %v2510_v10, %v2499_v50 }
 0x3ff   :  { %v2513_v29 = vmul.f32 %v2511_v35, %v2455_v23  ;;  %3485 = vmatmul.msk.f32.vlgmr.msrb.gmra.mxu0 %vm1195_vm9, %v2511_v35  ;;  %3486 = vmatmul.msk.f32.vlgmr.msrb.gmra.mxu1 %vm1195_vm9, %v2511_v35 }
 0x401   :  { %v2514_v48 = vsub.f32 %v2512_v6, %v2513_v29 }
 0x403   :  { %3487 = vmatmul.msk.f32.vlgmr.msrb.gmra.mxu2 %vm1195_vm9, %v2514_v48  ;;  %3488 = vmatmul.msk.f32.vlgmr.msrb.gmra.mxu3 %vm1195_vm9, %v2514_v48 }
 0x47c   :  { %v2539_v52 = vpop.f32.mrf.mxu0  ;;  %v2559_v59 = vpop.f32.mrf.mxu1 }
 0x47d   :  { %v2605_v31 = vperm.slane %v2539_v52, 0  ;;  %v2606_v47 = vperm.slane %v2559_v59, 0 }
 0x47f   :  { %v2607_v33 = vmul.f32 %v2605_v31, %v4462_v18  ;;  %v2609_v62 = vmul.f32 %v2605_v31, %v4460_v45  ;;  %v2611_v7 = vmul.f32 %v2605_v31, %v4472_v46  ;;  %v2613_v15 = vmul.f32 %v2605_v31, %v4509_v1  ;;  %v2627_v46 = vld [vmem:[%s4597_s1 + $0x10] sm:$0xff]  ;;  %v2629_v1 = vld [vmem:[%s4597_s1 + $0x20] sm:$0xff] }
 0x480   :  { %v2608_v12 = vmul.f32 %v2606_v47, %v4511_v3  ;;  %v2610_v8 = vmul.f32 %v2606_v47, %v4503_v27  ;;  %v2612_v18 = vmul.f32 %v2606_v47, %v4513_v49  ;;  %v2614_v45 = vmul.f32 %v2606_v47, %v4534_v36  ;;  %v2626_v49 = vld [vmem:[%s4597_s1 + $0x8] sm:$0xff]  ;;  %v2628_v36 = vld [vmem:[%s4597_s1 + $0x18] sm:$0xff]  ;;  %s3783_s1 = smov 256  }
 0x486   :  { %v2582_v57 = vpop.f32.mrf.mxu2  ;;  %v2602_v34 = vpop.f32.mrf.mxu3 }
 0x487   :  { %v2615_v42 = vperm.slane %v2582_v57, 0  ;;  %v2616_v44 = vperm.slane %v2602_v34, 0 }
 0x489   :  { %v2617_v4 = vadd.f32 %v2615_v42, %v2607_v33  ;;  %v2619_v3 = vadd.f32 %v2615_v42, %v2609_v62  ;;  %v2621_v9 = vadd.f32 %v2615_v42, %v2611_v7  ;;  %v2623_v27 = vadd.f32 %v2615_v42, %v2613_v15 }
 0x48a   :  { %v2618_v51 = vadd.f32 %v2616_v44, %v2608_v12  ;;  %v2620_v16 = vadd.f32 %v2616_v44, %v2610_v8  ;;  %v2622_v2 = vadd.f32 %v2616_v44, %v2612_v18  ;;  %v2624_v43 = vadd.f32 %v2616_v44, %v2614_v45 }
 0x48b   :  { %v2633_v41 = vadd.f32 %v2625_v17, %v2617_v4  ;;  %v2635_v30 = vadd.f32 %v2627_v46, %v2619_v3  ;;  %v2637_v39 = vadd.f32 %v2629_v1, %v2621_v9  ;;  %v2639_v60 = vadd.f32 %v2631_v32, %v2623_v27 }
 0x48c   :  { %v2634_v56 = vadd.f32 %v2626_v49, %v2618_v51  ;;  %v2636_v11 = vadd.f32 %v2628_v36, %v2620_v16  ;;  %v2638_v37 = vadd.f32 %v2630_v19, %v2622_v2  ;;  %v2640_v22 = vadd.f32 %v2632_v55, %v2624_v43 }
 0x48d   :  { %v2641_v26 = vmax.f32 %v2633_v41, 0.0  ;;  %v2643_v14 = vmax.f32 %v2635_v30, 0.0  ;;  %v2645_v54 = vmax.f32 %v2637_v39, 0.0  ;;  %v2647_v61 = vmax.f32 %v2639_v60, 0.0 }
 0x48e   :  { %v2642_v23 = vmax.f32 %v2634_v56, 0.0  ;;  %v2644_v63 = vmax.f32 %v2636_v11, 0.0  ;;  %v2646_v21 = vmax.f32 %v2638_v37, 0.0  ;;  %v2648_v38 = vmax.f32 %v2640_v22, 0.0 }
 0x48f   :  { %2649 = vst [vmem:[#allocation8] sm:$0xff] %v2641_v26 }
 0x490   :  { %2651 = vst [vmem:[#allocation8 + $0x10] sm:$0xff] %v2643_v14 }
 0x491   :  { %2653 = vst [vmem:[#allocation8 + $0x20] sm:$0xff] %v2645_v54 }
 0x492   :  { %2655 = vst [vmem:[#allocation8 + $0x30] sm:$0xff] %v2647_v61 }
 0x493   :  { %2650 = vst [vmem:[#allocation8 + $0x8] sm:$0xff] %v2642_v23 }
 0x494   :  { %2652 = vst [vmem:[#allocation8 + $0x18] sm:$0xff] %v2644_v63 }
 0x495   :  { %2654 = vst [vmem:[#allocation8 + $0x28] sm:$0xff] %v2646_v21 }
 0x496   :  { %2656 = vst [vmem:[#allocation8 + $0x38] sm:$0xff] %v2648_v38 }
 0x497   :  { %2669 = dma.vmem_to_hbm [thread:$0]  %s2662_s8, 1024, %s2664_s11, [#allocation5], %s3783_s1, %s3783_s1, %s3784_s12  }
 0x498   :  { %3776 = dma.done.wait [#allocation5], 1024  }
 0x499   :  { %3777 = vsyncadd [#allocation5], 4294966272 }
 0x49a   :  { %2674 = vsyncpa [#allocation4], 1 }
 0x49b   :  { %2675 = vsyncpa [#allocation7], 1 }
 0x49c   :  { %2676 = vsyncpa [#allocation5], 1 }

</bundles_post_ra>
